<compile_context>
chip_gen: v6e
topology: v6e:2x2x1
jax: 0.10.0
libtpu: 0.0.40
codegen_flags: <defaults>
</compile_context>

<pallas_src>
import jax
import jax.numpy as jnp
from jax.experimental import pallas as pl
from jax.experimental.pallas import tpu as pltpu


def _round_up(x, m):
    return ((x + m - 1) // m) * m


# ----------------------------------------------------------------------------
# Fused 4-layer MLP kernel: 3 x (Linear + Swish) followed by a final Linear.
# Matmul inputs are bf16, accumulation and elementwise math are f32.
# ----------------------------------------------------------------------------
def _encoder_kernel(x_ref, w1_ref, b1_ref, w2_ref, b2_ref,
                    w3_ref, b3_ref, w4_ref, b4_ref, o_ref):
    def swish(v):
        # v * sigmoid(v); exp + approx reciprocal both go to the EUP slot.
        return v * pl.reciprocal(1.0 + jnp.exp(-v), approx=True)

    h = jnp.dot(x_ref[...], w1_ref[...], preferred_element_type=jnp.float32)
    h = swish(h + b1_ref[...])
    h = jnp.dot(h.astype(w2_ref.dtype), w2_ref[...],
                preferred_element_type=jnp.float32)
    h = swish(h + b2_ref[...])
    h = jnp.dot(h.astype(w3_ref.dtype), w3_ref[...],
                preferred_element_type=jnp.float32)
    h = swish(h + b3_ref[...])
    out = jnp.dot(h.astype(w4_ref.dtype), w4_ref[...],
                  preferred_element_type=jnp.float32)
    o_ref[...] = (out + b4_ref[...]).astype(o_ref.dtype)


def mhd_trajectory_encoder(params, x, *, tile_m=512):
    """x: (B, 200) f32 -> (B, latent_dim) f32."""
    B, D_in = x.shape
    K1, H1 = params["w1"].shape
    H2 = params["w2"].shape[1]
    H3 = params["w3"].shape[1]
    latent_dim = params["w4"].shape[1]
    assert D_in == K1

    # Lane-dense output: pad the final layer's N to a multiple of 128 so the
    # output stores are unmasked; padded columns are sliced off afterwards.
    N_out = _round_up(max(latent_dim, 128), 128)
    w4, b4 = params["w4"], params["b4"]
    if N_out != latent_dim:
        w4 = jnp.pad(w4, ((0, 0), (0, N_out - latent_dim)))
        b4 = jnp.pad(b4, ((0, N_out - latent_dim),))

    # Pad the layer-1 contraction dim 200 -> 256 (clean 2x128 lane groups).
    K_pad = _round_up(K1, 128)
    w1 = params["w1"]
    if K_pad != K1:
        x = jnp.pad(x, ((0, 0), (0, K_pad - K1)))
        w1 = jnp.pad(w1, ((0, K_pad - K1), (0, 0)))

    # Pad batch to a sublane multiple and pick an M tile (M axis is "parallel").
    M_pad = _round_up(B, 8)
    if M_pad <= tile_m:
        tm = M_pad
    else:
        M_pad = _round_up(M_pad, tile_m)
        tm = tile_m
    if M_pad != B:
        x = jnp.pad(x, ((0, M_pad - B), (0, 0)))

    # bf16 matmul inputs; f32 accumulation happens inside the kernel.
    x_bf = x.astype(jnp.bfloat16)
    w1_bf = w1.astype(jnp.bfloat16)
    w2_bf = params["w2"].astype(jnp.bfloat16)
    w3_bf = params["w3"].astype(jnp.bfloat16)
    w4_bf = w4.astype(jnp.bfloat16)

    # Biases stay f32 (added to the f32 accumulator).
    b1 = params["b1"].reshape(1, H1).astype(jnp.float32)
    b2 = params["b2"].reshape(1, H2).astype(jnp.float32)
    b3 = params["b3"].reshape(1, H3).astype(jnp.float32)
    b4 = b4.reshape(1, N_out).astype(jnp.float32)

    grid = (M_pad // tm,)
    # Weights/biases have a constant index_map -> fetched once; single-buffer
    # them so only the x tile and the output tile get double buffers.
    resident = dict(pipeline_mode=pl.Buffered(1))

    out = pl.pallas_call(
        _encoder_kernel,
        out_shape=jax.ShapeDtypeStruct((M_pad, N_out), jnp.float32),
        grid_spec=pltpu.PrefetchScalarGridSpec(
            num_scalar_prefetch=0,
            grid=grid,
            in_specs=[
                pl.BlockSpec((tm, K_pad), lambda i: (i, 0)),            # x tile
                pl.BlockSpec((K_pad, H1), lambda i: (0, 0), **resident),
                pl.BlockSpec((1, H1), lambda i: (0, 0), **resident),
                pl.BlockSpec((H1, H2), lambda i: (0, 0), **resident),
                pl.BlockSpec((1, H2), lambda i: (0, 0), **resident),
                pl.BlockSpec((H2, H3), lambda i: (0, 0), **resident),
                pl.BlockSpec((1, H3), lambda i: (0, 0), **resident),
                pl.BlockSpec((H3, N_out), lambda i: (0, 0), **resident),
                pl.BlockSpec((1, N_out), lambda i: (0, 0), **resident),
            ],
            out_specs=pl.BlockSpec((tm, N_out), lambda i: (i, 0)),
        ),
        compiler_params=pltpu.CompilerParams(
            dimension_semantics=("parallel",),
            vmem_limit_bytes=32 * 1024 * 1024,
        ),
    )(x_bf, w1_bf, b1, w2_bf, b2, w3_bf, b3, w4_bf, b4)

    return out[:B, :latent_dim]


# ----------------------------------------------------------------------------
# Parameters (same structure as the PyTorch module; all Linears have bias).
# ----------------------------------------------------------------------------
def init_params(key, latent_dim):
    ks = jax.random.split(key, 8)
    s = 0.05
    return dict(
        w1=jax.random.normal(ks[0], (200, 512), jnp.float32) * s,
        b1=jax.random.normal(ks[1], (512,), jnp.float32) * s,
        w2=jax.random.normal(ks[2], (512, 512), jnp.float32) * s,
        b2=jax.random.normal(ks[3], (512,), jnp.float32) * s,
        w3=jax.random.normal(ks[4], (512, 512), jnp.float32) * s,
        b3=jax.random.normal(ks[5], (512,), jnp.float32) * s,
        w4=jax.random.normal(ks[6], (512, latent_dim), jnp.float32) * s,
        b4=jax.random.normal(ks[7], (latent_dim,), jnp.float32) * s,
    )


def _reference(params, x):
    def sw(v):
        return v * jax.nn.sigmoid(v)
    h = sw(x @ params["w1"] + params["b1"])
    h = sw(h @ params["w2"] + params["b2"])
    h = sw(h @ params["w3"] + params["b3"])
    return h @ params["w4"] + params["b4"]


if __name__ == "__main__":
    latent_dim = 32
    batch = 2
    key = jax.random.PRNGKey(0)
    pkey, xkey = jax.random.split(key)
    params = init_params(pkey, latent_dim)
    x = jax.random.normal(xkey, (batch, 200), jnp.float32)

    out = jax.jit(mhd_trajectory_encoder)(params, x)
    out = jax.block_until_ready(out)

    ref = _reference(params, x)
    assert out.shape == (batch, latent_dim), out.shape
    assert out.dtype == jnp.float32
    # bf16 matmul inputs + f32 accumulation + approx reciprocal => ~1% numerics.
    assert bool(jnp.allclose(out, ref, atol=2e-2, rtol=2e-2))
    print("KERNEL_OK")
</pallas_src>

<mosaic_0001>
module attributes {stable_mosaic.version = 11 : i64} {
  func.func @_encoder_kernel(%arg0: i32, %arg1: memref<8x256xbf16, #tpu.memory_space<vmem>>, %arg2: memref<256x512xbf16, #tpu.memory_space<vmem>>, %arg3: memref<1x512xf32, #tpu.memory_space<vmem>>, %arg4: memref<512x512xbf16, #tpu.memory_space<vmem>>, %arg5: memref<1x512xf32, #tpu.memory_space<vmem>>, %arg6: memref<512x512xbf16, #tpu.memory_space<vmem>>, %arg7: memref<1x512xf32, #tpu.memory_space<vmem>>, %arg8: memref<512x128xbf16, #tpu.memory_space<vmem>>, %arg9: memref<1x128xf32, #tpu.memory_space<vmem>>, %arg10: memref<8x128xf32, #tpu.memory_space<vmem>>) attributes {dimension_semantics = [#tpu.dimension_semantics<parallel>], iteration_bounds = array<i64: 1>, scalar_prefetch = 0 : i64, scratch_operands = 0 : i64, tpu.core_type = #tpu.core_type<tc>, window_params = [{transform_indices = @transform_0, window_bounds = array<i64: 8, 256>}, {pipeline_mode = #tpu.pipeline_mode<synchronous>, transform_indices = @transform_1, window_bounds = array<i64: 256, 512>}, {pipeline_mode = #tpu.pipeline_mode<synchronous>, transform_indices = @transform_2, window_bounds = array<i64: 1, 512>}, {pipeline_mode = #tpu.pipeline_mode<synchronous>, transform_indices = @transform_3, window_bounds = array<i64: 512, 512>}, {pipeline_mode = #tpu.pipeline_mode<synchronous>, transform_indices = @transform_4, window_bounds = array<i64: 1, 512>}, {pipeline_mode = #tpu.pipeline_mode<synchronous>, transform_indices = @transform_5, window_bounds = array<i64: 512, 512>}, {pipeline_mode = #tpu.pipeline_mode<synchronous>, transform_indices = @transform_6, window_bounds = array<i64: 1, 512>}, {pipeline_mode = #tpu.pipeline_mode<synchronous>, transform_indices = @transform_7, window_bounds = array<i64: 512, 128>}, {pipeline_mode = #tpu.pipeline_mode<synchronous>, transform_indices = @transform_8, window_bounds = array<i64: 1, 128>}, {transform_indices = @transform_9, window_bounds = array<i64: 8, 128>}]} {
    %c0 = arith.constant 0 : index
    %c0_0 = arith.constant 0 : index
    %0 = vector.load %arg1[%c0, %c0_0] : memref<8x256xbf16, #tpu.memory_space<vmem>>, vector<8x256xbf16>
    %c0_1 = arith.constant 0 : index
    %c0_2 = arith.constant 0 : index
    %1 = vector.load %arg2[%c0_1, %c0_2] : memref<256x512xbf16, #tpu.memory_space<vmem>>, vector<256x512xbf16>
    %cst = arith.constant dense<0.000000e+00> : vector<8x512xf32>
    %2 = tpu.matmul %0, %1, %cst {dimension_numbers = #tpu.dot_dimension_numbers<[1], [0], [0], [1], [0, 0, 1, 1], [], []>} : vector<8x256xbf16>, vector<256x512xbf16>, vector<8x512xf32> -> vector<8x512xf32>
    %c0_3 = arith.constant 0 : index
    %c0_4 = arith.constant 0 : index
    %3 = vector.load %arg3[%c0_3, %c0_4] : memref<1x512xf32, #tpu.memory_space<vmem>>, vector<1x512xf32>
    %4 = vector.broadcast %3 : vector<1x512xf32> to vector<8x512xf32>
    %5 = arith.addf %2, %4 : vector<8x512xf32>
    %cst_5 = arith.constant 0.000000e+00 : f32
    %6 = vector.broadcast %cst_5 : f32 to vector<8x512xf32>
    %7 = arith.subf %6, %5 : vector<8x512xf32>
    %8 = math.exp %7 : vector<8x512xf32>
    %cst_6 = arith.constant 1.000000e+00 : f32
    %9 = vector.broadcast %cst_6 : f32 to vector<8x512xf32>
    %10 = arith.addf %9, %8 : vector<8x512xf32>
    %11 = tpu.reciprocal %10 {approx = true} : vector<8x512xf32> -> vector<8x512xf32>
    %12 = arith.mulf %5, %11 : vector<8x512xf32>
    %13 = arith.truncf %12 : vector<8x512xf32> to vector<8x512xbf16>
    %c0_7 = arith.constant 0 : index
    %c0_8 = arith.constant 0 : index
    %14 = vector.load %arg4[%c0_7, %c0_8] : memref<512x512xbf16, #tpu.memory_space<vmem>>, vector<512x512xbf16>
    %cst_9 = arith.constant dense<0.000000e+00> : vector<8x512xf32>
    %15 = tpu.matmul %13, %14, %cst_9 {dimension_numbers = #tpu.dot_dimension_numbers<[1], [0], [0], [1], [0, 0, 1, 1], [], []>} : vector<8x512xbf16>, vector<512x512xbf16>, vector<8x512xf32> -> vector<8x512xf32>
    %c0_10 = arith.constant 0 : index
    %c0_11 = arith.constant 0 : index
    %16 = vector.load %arg5[%c0_10, %c0_11] : memref<1x512xf32, #tpu.memory_space<vmem>>, vector<1x512xf32>
    %17 = vector.broadcast %16 : vector<1x512xf32> to vector<8x512xf32>
    %18 = arith.addf %15, %17 : vector<8x512xf32>
    %cst_12 = arith.constant 0.000000e+00 : f32
    %19 = vector.broadcast %cst_12 : f32 to vector<8x512xf32>
    %20 = arith.subf %19, %18 : vector<8x512xf32>
    %21 = math.exp %20 : vector<8x512xf32>
    %cst_13 = arith.constant 1.000000e+00 : f32
    %22 = vector.broadcast %cst_13 : f32 to vector<8x512xf32>
    %23 = arith.addf %22, %21 : vector<8x512xf32>
    %24 = tpu.reciprocal %23 {approx = true} : vector<8x512xf32> -> vector<8x512xf32>
    %25 = arith.mulf %18, %24 : vector<8x512xf32>
    %26 = arith.truncf %25 : vector<8x512xf32> to vector<8x512xbf16>
    %c0_14 = arith.constant 0 : index
    %c0_15 = arith.constant 0 : index
    %27 = vector.load %arg6[%c0_14, %c0_15] : memref<512x512xbf16, #tpu.memory_space<vmem>>, vector<512x512xbf16>
    %cst_16 = arith.constant dense<0.000000e+00> : vector<8x512xf32>
    %28 = tpu.matmul %26, %27, %cst_16 {dimension_numbers = #tpu.dot_dimension_numbers<[1], [0], [0], [1], [0, 0, 1, 1], [], []>} : vector<8x512xbf16>, vector<512x512xbf16>, vector<8x512xf32> -> vector<8x512xf32>
    %c0_17 = arith.constant 0 : index
    %c0_18 = arith.constant 0 : index
    %29 = vector.load %arg7[%c0_17, %c0_18] : memref<1x512xf32, #tpu.memory_space<vmem>>, vector<1x512xf32>
    %30 = vector.broadcast %29 : vector<1x512xf32> to vector<8x512xf32>
    %31 = arith.addf %28, %30 : vector<8x512xf32>
    %cst_19 = arith.constant 0.000000e+00 : f32
    %32 = vector.broadcast %cst_19 : f32 to vector<8x512xf32>
    %33 = arith.subf %32, %31 : vector<8x512xf32>
    %34 = math.exp %33 : vector<8x512xf32>
    %cst_20 = arith.constant 1.000000e+00 : f32
    %35 = vector.broadcast %cst_20 : f32 to vector<8x512xf32>
    %36 = arith.addf %35, %34 : vector<8x512xf32>
    %37 = tpu.reciprocal %36 {approx = true} : vector<8x512xf32> -> vector<8x512xf32>
    %38 = arith.mulf %31, %37 : vector<8x512xf32>
    %39 = arith.truncf %38 : vector<8x512xf32> to vector<8x512xbf16>
    %c0_21 = arith.constant 0 : index
    %c0_22 = arith.constant 0 : index
    %40 = vector.load %arg8[%c0_21, %c0_22] : memref<512x128xbf16, #tpu.memory_space<vmem>>, vector<512x128xbf16>
    %cst_23 = arith.constant dense<0.000000e+00> : vector<8x128xf32>
    %41 = tpu.matmul %39, %40, %cst_23 {dimension_numbers = #tpu.dot_dimension_numbers<[1], [0], [0], [1], [0, 0, 1, 1], [], []>} : vector<8x512xbf16>, vector<512x128xbf16>, vector<8x128xf32> -> vector<8x128xf32>
    %c0_24 = arith.constant 0 : index
    %c0_25 = arith.constant 0 : index
    %42 = vector.load %arg9[%c0_24, %c0_25] : memref<1x128xf32, #tpu.memory_space<vmem>>, vector<1x128xf32>
    %43 = vector.broadcast %42 : vector<1x128xf32> to vector<8x128xf32>
    %44 = arith.addf %41, %43 : vector<8x128xf32>
    %c0_26 = arith.constant 0 : index
    %c0_27 = arith.constant 0 : index
    %45 = vector.load %arg10[%c0_26, %c0_27] : memref<8x128xf32, #tpu.memory_space<vmem>>, vector<8x128xf32>
    tpu.vector_store %arg10[%c0_26, %c0_27], %44 {strides = array<i32>} : memref<8x128xf32, #tpu.memory_space<vmem>>, vector<8x128xf32>,
    return
  }
  func.func @transform_0(%arg0: i32) -> (i32, i32) {
    %c0_i32 = arith.constant 0 : i32
    %c0_i32_0 = arith.constant 0 : i32
    return %arg0, %c0_i32 : i32, i32
  }
  func.func @transform_1(%arg0: i32) -> (i32, i32) {
    %c0_i32 = arith.constant 0 : i32
    %c0_i32_0 = arith.constant 0 : i32
    %c0_i32_1 = arith.constant 0 : i32
    return %c0_i32, %c0_i32_0 : i32, i32
  }
  func.func @transform_2(%arg0: i32) -> (i32, i32) {
    %c0_i32 = arith.constant 0 : i32
    %c0_i32_0 = arith.constant 0 : i32
    %c0_i32_1 = arith.constant 0 : i32
    return %c0_i32, %c0_i32_0 : i32, i32
  }
  func.func @transform_3(%arg0: i32) -> (i32, i32) {
    %c0_i32 = arith.constant 0 : i32
    %c0_i32_0 = arith.constant 0 : i32
    %c0_i32_1 = arith.constant 0 : i32
    return %c0_i32, %c0_i32_0 : i32, i32
  }
  func.func @transform_4(%arg0: i32) -> (i32, i32) {
    %c0_i32 = arith.constant 0 : i32
    %c0_i32_0 = arith.constant 0 : i32
    %c0_i32_1 = arith.constant 0 : i32
    return %c0_i32, %c0_i32_0 : i32, i32
  }
  func.func @transform_5(%arg0: i32) -> (i32, i32) {
    %c0_i32 = arith.constant 0 : i32
    %c0_i32_0 = arith.constant 0 : i32
    %c0_i32_1 = arith.constant 0 : i32
    return %c0_i32, %c0_i32_0 : i32, i32
  }
  func.func @transform_6(%arg0: i32) -> (i32, i32) {
    %c0_i32 = arith.constant 0 : i32
    %c0_i32_0 = arith.constant 0 : i32
    %c0_i32_1 = arith.constant 0 : i32
    return %c0_i32, %c0_i32_0 : i32, i32
  }
  func.func @transform_7(%arg0: i32) -> (i32, i32) {
    %c0_i32 = arith.constant 0 : i32
    %c0_i32_0 = arith.constant 0 : i32
    %c0_i32_1 = arith.constant 0 : i32
    return %c0_i32, %c0_i32_0 : i32, i32
  }
  func.func @transform_8(%arg0: i32) -> (i32, i32) {
    %c0_i32 = arith.constant 0 : i32
    %c0_i32_0 = arith.constant 0 : i32
    %c0_i32_1 = arith.constant 0 : i32
    return %c0_i32, %c0_i32_0 : i32, i32
  }
  func.func @transform_9(%arg0: i32) -> (i32, i32) {
    %c0_i32 = arith.constant 0 : i32
    %c0_i32_0 = arith.constant 0 : i32
    return %arg0, %c0_i32 : i32, i32
  }
}

</mosaic_0001>

<bundles_post_ra>
// kernel: mhd_trajectory_encoder.1
= control target key start
LH: loop header
LB: loop body
LE: loop exit
PB: predicated region body
PF: predicated region fallthrough
CT: control target
= control target key end

     0   :  { %s4996_s1 = inlined_call_operand.vmem [shape: bf16[256,512], index: 1, kind: input, shape index: {}]   ;;  %s4997_s0 = inlined_call_operand.vmem [shape: bf16[8,256], index: 0, kind: input, shape index: {}]   ;;  %s4998_s3 = inlined_call_operand.vmem [shape: bf16[512,512], index: 3, kind: input, shape index: {}]   ;;  %s4999_s5 = inlined_call_operand.vmem [shape: bf16[512,512], index: 5, kind: input, shape index: {}]   ;;  %s5000_s2 = inlined_call_operand.vmem [shape: f32[1,512], index: 2, kind: input, shape index: {}]   ;;  %s5001_s4 = inlined_call_operand.vmem [shape: f32[1,512], index: 4, kind: input, shape index: {}]   ;;  %s5002_s7 = inlined_call_operand.vmem [shape: bf16[512,128], index: 7, kind: input, shape index: {}]   ;;  %s5003_s6 = inlined_call_operand.vmem [shape: f32[1,512], index: 6, kind: input, shape index: {}]   ;;  %s5004_s8 = inlined_call_operand.vmem [shape: f32[1,128], index: 8, kind: input, shape index: {}]   ;;  %s5005_s9 = inlined_call_operand.vmem [shape: f32[8,128], index: 9, kind: output, shape index: {}]  }
   0x1   :  { %v3268_v0 = vld [vmem:[%s4996_s1 + $0xe4] ss:$16 sps:$4 sm:$0xff]   ;;  %v3270_v1 = vld [vmem:[%s4996_s1 + $0xec] ss:$16 sps:$4 sm:$0xff]   ;;  %v3272_v2 = vld [vmem:[%s4996_s1 + $0xe0] ss:$16 sps:$4 sm:$0xff]  }
   0x2   :  { %447 = vmatprep.subr.bf16.mxu0 %v3268_v0  ;;  %v3273_v3 = vld [vmem:[%s4996_s1 + $0xe8] ss:$16 sps:$4 sm:$0xff]   ;;  %488 = vmatprep.subr.bf16.mxu1 %v3270_v1  ;;  %v3274_v4 = vld [vmem:[%s4996_s1 + $0xc4] ss:$16 sps:$4 sm:$0xff]   ;;  %v3276_v5 = vld [vmem:[%s4996_s1 + $0xcc] ss:$16 sps:$4 sm:$0xff]  }
   0x3   :  { %448 = vmatpush1.bf16.msra.mxu0 %v3272_v2  ;;  %489 = vmatpush1.bf16.msra.mxu1 %v3273_v3  ;;  %v3278_v6 = vld [vmem:[%s4996_s1 + $0xc0] ss:$16 sps:$4 sm:$0xff]   ;;  %v3279_v7 = vld [vmem:[%s4996_s1 + $0xc8] ss:$16 sps:$4 sm:$0xff]   ;;  %v3280_v8 = vld [vmem:[%s4996_s1 + $0xa4] ss:$16 sps:$4 sm:$0xff]  }
   0x4   :  { %449 = vmatprep.subr.bf16.mxu0 %v3274_v4  ;;  %490 = vmatprep.subr.bf16.mxu1 %v3276_v5  ;;  %v3282_v9 = vld [vmem:[%s4996_s1 + $0xac] ss:$16 sps:$4 sm:$0xff]   ;;  %v3284_v10 = vld [vmem:[%s4996_s1 + $0xa0] ss:$16 sps:$4 sm:$0xff]   ;;  %v3285_v11 = vld [vmem:[%s4996_s1 + $0xa8] ss:$16 sps:$4 sm:$0xff]  }
   0x5   :  { %v3286_v12 = vld [vmem:[%s4996_s1 + $0x84] ss:$16 sps:$4 sm:$0xff]   ;;  %v3288_v13 = vld [vmem:[%s4996_s1 + $0x8c] ss:$16 sps:$4 sm:$0xff]   ;;  %v3290_v14 = vld [vmem:[%s4996_s1 + $0x80] ss:$16 sps:$4 sm:$0xff]  }
   0x6   :  { %v3291_v15 = vld [vmem:[%s4996_s1 + $0x88] ss:$16 sps:$4 sm:$0xff]   ;;  %v3292_v16 = vld [vmem:[%s4996_s1 + $0x64] ss:$16 sps:$4 sm:$0xff]   ;;  %v3294_v17 = vld [vmem:[%s4996_s1 + $0x6c] ss:$16 sps:$4 sm:$0xff]  }
   0x7   :  { %450 = vmatpush1.bf16.msra.mxu0 %v3278_v6  ;;  %491 = vmatpush1.bf16.msra.mxu1 %v3279_v7  ;;  %v3296_v18 = vld [vmem:[%s4996_s1 + $0x60] ss:$16 sps:$4 sm:$0xff]   ;;  %v3297_v19 = vld [vmem:[%s4996_s1 + $0x68] ss:$16 sps:$4 sm:$0xff]   ;;  %v3298_v20 = vld [vmem:[%s4996_s1 + $0x44] ss:$16 sps:$4 sm:$0xff]  }
   0x8   :  { %451 = vmatprep.subr.bf16.mxu0 %v3280_v8  ;;  %492 = vmatprep.subr.bf16.mxu1 %v3282_v9  ;;  %v3300_v21 = vld [vmem:[%s4996_s1 + $0x4c] ss:$16 sps:$4 sm:$0xff]   ;;  %v3302_v22 = vld [vmem:[%s4996_s1 + $0x40] ss:$16 sps:$4 sm:$0xff]   ;;  %v3303_v23 = vld [vmem:[%s4996_s1 + $0x48] ss:$16 sps:$4 sm:$0xff]  }
   0x9   :  { %v3304_v24 = vld [vmem:[%s4996_s1 + $0x24] ss:$16 sps:$4 sm:$0xff]   ;;  %v3306_v25 = vld [vmem:[%s4996_s1 + $0x2c] ss:$16 sps:$4 sm:$0xff]   ;;  %v3308_v26 = vld [vmem:[%s4996_s1 + $0x20] ss:$16 sps:$4 sm:$0xff]  }
   0xa   :  { %v3309_v27 = vld [vmem:[%s4996_s1 + $0x28] ss:$16 sps:$4 sm:$0xff]   ;;  %v3310_v28 = vld [vmem:[%s4996_s1 + $0x4] ss:$16 sps:$4 sm:$0xff]   ;;  %v3312_v29 = vld [vmem:[%s4996_s1 + $0xc] ss:$16 sps:$4 sm:$0xff]  }
   0xb   :  { %452 = vmatpush1.bf16.msra.mxu0 %v3284_v10  ;;  %493 = vmatpush1.bf16.msra.mxu1 %v3285_v11  ;;  %v3314_v30 = vld [vmem:[%s4996_s1] ss:$16 sps:$4 sm:$0xff]   ;;  %v3315_v31 = vld [vmem:[%s4996_s1 + $0x8] ss:$16 sps:$4 sm:$0xff]   ;;  %v3316_v32 = vld [vmem:[%s4996_s1 + $0x1e4] ss:$16 sps:$4 sm:$0xff]  }
   0xc   :  { %453 = vmatprep.subr.bf16.mxu0 %v3286_v12  ;;  %494 = vmatprep.subr.bf16.mxu1 %v3288_v13  ;;  %v3318_v33 = vld [vmem:[%s4996_s1 + $0x1ec] ss:$16 sps:$4 sm:$0xff]   ;;  %v3320_v34 = vld [vmem:[%s4996_s1 + $0x1e0] ss:$16 sps:$4 sm:$0xff]   ;;  %v3321_v35 = vld [vmem:[%s4996_s1 + $0x1e8] ss:$16 sps:$4 sm:$0xff]  }
   0xd   :  { %v3322_v36 = vld [vmem:[%s4996_s1 + $0x1c4] ss:$16 sps:$4 sm:$0xff]   ;;  %v3324_v37 = vld [vmem:[%s4996_s1 + $0x1cc] ss:$16 sps:$4 sm:$0xff]   ;;  %v3326_v38 = vld [vmem:[%s4996_s1 + $0x1c0] ss:$16 sps:$4 sm:$0xff]  }
   0xe   :  { %v3327_v39 = vld [vmem:[%s4996_s1 + $0x1c8] ss:$16 sps:$4 sm:$0xff]   ;;  %v3328_v40 = vld [vmem:[%s4996_s1 + $0x1a4] ss:$16 sps:$4 sm:$0xff]   ;;  %v3330_v41 = vld [vmem:[%s4996_s1 + $0x1ac] ss:$16 sps:$4 sm:$0xff]  }
   0xf   :  { %454 = vmatpush1.bf16.msra.mxu0 %v3290_v14  ;;  %495 = vmatpush1.bf16.msra.mxu1 %v3291_v15  ;;  %v3332_v42 = vld [vmem:[%s4996_s1 + $0x1a0] ss:$16 sps:$4 sm:$0xff]   ;;  %v3333_v43 = vld [vmem:[%s4996_s1 + $0x1a8] ss:$16 sps:$4 sm:$0xff]   ;;  %v3334_v44 = vld [vmem:[%s4996_s1 + $0x184] ss:$16 sps:$4 sm:$0xff]  }
  0x10   :  { %455 = vmatprep.subr.bf16.mxu0 %v3292_v16  ;;  %496 = vmatprep.subr.bf16.mxu1 %v3294_v17  ;;  %v3336_v45 = vld [vmem:[%s4996_s1 + $0x18c] ss:$16 sps:$4 sm:$0xff]   ;;  %v33_v46 = vld [vmem:[%s4997_s0] sm:$0xff]  ;;  %v3339_v49 = vld [vmem:[%s4996_s1 + $0x188] ss:$16 sps:$4 sm:$0xff]  }
  0x11   :  { %v3338_v47 = vld [vmem:[%s4996_s1 + $0x180] ss:$16 sps:$4 sm:$0xff]   ;;  %v2870_v48 = vcombine.high %v33_v46, %v33_v46  ;;  %v3340_v50 = vld [vmem:[%s4996_s1 + $0x164] ss:$16 sps:$4 sm:$0xff]   ;;  %v3342_v51 = vld [vmem:[%s4996_s1 + $0x16c] ss:$16 sps:$4 sm:$0xff]   ;;  %v2869_v6 = vcombine.low %v33_v46, %v33_v46 }
  0x12   :  { %v3344_v52 = vld [vmem:[%s4996_s1 + $0x160] ss:$16 sps:$4 sm:$0xff]   ;;  %v3345_v53 = vld [vmem:[%s4996_s1 + $0x168] ss:$16 sps:$4 sm:$0xff]   ;;  %v3346_v54 = vld [vmem:[%s4996_s1 + $0x144] ss:$16 sps:$4 sm:$0xff]  }
  0x13   :  { %456 = vmatpush1.bf16.msra.mxu0 %v3296_v18  ;;  %497 = vmatpush1.bf16.msra.mxu1 %v3297_v19  ;;  %v3348_v55 = vld [vmem:[%s4996_s1 + $0x14c] ss:$16 sps:$4 sm:$0xff]   ;;  %v3350_v56 = vld [vmem:[%s4996_s1 + $0x140] ss:$16 sps:$4 sm:$0xff]   ;;  %v3351_v57 = vld [vmem:[%s4996_s1 + $0x148] ss:$16 sps:$4 sm:$0xff]  }
  0x14   :  { %457 = vmatprep.subr.bf16.mxu0 %v3298_v20  ;;  %498 = vmatprep.subr.bf16.mxu1 %v3300_v21  ;;  %v3352_v58 = vld [vmem:[%s4996_s1 + $0x124] ss:$16 sps:$4 sm:$0xff]   ;;  %v3354_v59 = vld [vmem:[%s4996_s1 + $0x12c] ss:$16 sps:$4 sm:$0xff]   ;;  %v3356_v60 = vld [vmem:[%s4996_s1 + $0x120] ss:$16 sps:$4 sm:$0xff]  }
  0x15   :  { %479 = vmatprep.mubr.bf16.mxu0 %v2870_v48  ;;  %520 = vmatprep.mubr.bf16.mxu1 %v2870_v48  ;;  %v3357_v61 = vld [vmem:[%s4996_s1 + $0x128] ss:$16 sps:$4 sm:$0xff]   ;;  %v3358_v62 = vld [vmem:[%s4996_s1 + $0x104] ss:$16 sps:$4 sm:$0xff]   ;;  %v3360_v63 = vld [vmem:[%s4996_s1 + $0x10c] ss:$16 sps:$4 sm:$0xff]  }
  0x16   :  { %v3362_v0 = vld [vmem:[%s4996_s1 + $0x100] ss:$16 sps:$4 sm:$0xff]   ;;  %v3363_v1 = vld [vmem:[%s4996_s1 + $0x108] ss:$16 sps:$4 sm:$0xff]   ;;  %v3368_v2 = vld [vmem:[%s4998_s3 + $0xe4] ss:$16 sps:$4 sm:$0xff]  }
  0x17   :  { %458 = vmatpush1.bf16.msra.mxu0 %v3302_v22  ;;  %499 = vmatpush1.bf16.msra.mxu1 %v3303_v23  ;;  %v3371_v3 = vld [vmem:[%s4998_s3 + $0x2e4] ss:$16 sps:$4 sm:$0xff]   ;;  %v3366_v4 = vld [vmem:[%s4998_s3 + $0xe0] ss:$16 sps:$4 sm:$0xff]  }
  0x18   :  { %459 = vmatprep.subr.bf16.mxu0 %v3304_v24  ;;  %500 = vmatprep.subr.bf16.mxu1 %v3306_v25  ;;  %v3369_v5 = vld [vmem:[%s4998_s3 + $0x2e0] ss:$16 sps:$4 sm:$0xff]   ;;  %v3374_v7 = vld [vmem:[%s4998_s3 + $0xc4] ss:$16 sps:$4 sm:$0xff]  }
  0x19   :  { %v3377_v8 = vld [vmem:[%s4998_s3 + $0x2c4] ss:$16 sps:$4 sm:$0xff]   ;;  %v3372_v9 = vld [vmem:[%s4998_s3 + $0xc0] ss:$16 sps:$4 sm:$0xff]  }
  0x1a   :  { %v3375_v10 = vld [vmem:[%s4998_s3 + $0x2c0] ss:$16 sps:$4 sm:$0xff]   ;;  %v3380_v11 = vld [vmem:[%s4998_s3 + $0xa4] ss:$16 sps:$4 sm:$0xff]  }
  0x1b   :  { %460 = vmatpush1.bf16.msra.mxu0 %v3308_v26  ;;  %501 = vmatpush1.bf16.msra.mxu1 %v3309_v27  ;;  %v3383_v12 = vld [vmem:[%s4998_s3 + $0x2a4] ss:$16 sps:$4 sm:$0xff]   ;;  %v3378_v13 = vld [vmem:[%s4998_s3 + $0xa0] ss:$16 sps:$4 sm:$0xff]  }
  0x1c   :  { %461 = vmatprep.subr.bf16.mxu0 %v3310_v28  ;;  %502 = vmatprep.subr.bf16.mxu1 %v3312_v29  ;;  %v3381_v14 = vld [vmem:[%s4998_s3 + $0x2a0] ss:$16 sps:$4 sm:$0xff]   ;;  %v3386_v15 = vld [vmem:[%s4998_s3 + $0x84] ss:$16 sps:$4 sm:$0xff]  }
  0x1d   :  { %v3389_v16 = vld [vmem:[%s4998_s3 + $0x284] ss:$16 sps:$4 sm:$0xff]   ;;  %v3384_v17 = vld [vmem:[%s4998_s3 + $0x80] ss:$16 sps:$4 sm:$0xff]  }
  0x1e   :  { %v3387_v18 = vld [vmem:[%s4998_s3 + $0x280] ss:$16 sps:$4 sm:$0xff]   ;;  %v3392_v19 = vld [vmem:[%s4998_s3 + $0x64] ss:$16 sps:$4 sm:$0xff]  }
  0x1f   :  { %462 = vmatpush1.bf16.msra.mxu0 %v3314_v30  ;;  %503 = vmatpush1.bf16.msra.mxu1 %v3315_v31  ;;  %v3395_v20 = vld [vmem:[%s4998_s3 + $0x264] ss:$16 sps:$4 sm:$0xff]   ;;  %v3390_v21 = vld [vmem:[%s4998_s3 + $0x60] ss:$16 sps:$4 sm:$0xff]  }
  0x20   :  { %463 = vmatprep.subr.bf16.mxu0 %v3316_v32  ;;  %504 = vmatprep.subr.bf16.mxu1 %v3318_v33  ;;  %v3393_v22 = vld [vmem:[%s4998_s3 + $0x260] ss:$16 sps:$4 sm:$0xff]   ;;  %v3398_v23 = vld [vmem:[%s4998_s3 + $0x44] ss:$16 sps:$4 sm:$0xff]  }
  0x21   :  { %v3401_v24 = vld [vmem:[%s4998_s3 + $0x244] ss:$16 sps:$4 sm:$0xff]   ;;  %v3396_v25 = vld [vmem:[%s4998_s3 + $0x40] ss:$16 sps:$4 sm:$0xff]  }
  0x22   :  { %v3399_v26 = vld [vmem:[%s4998_s3 + $0x240] ss:$16 sps:$4 sm:$0xff]   ;;  %v3404_v27 = vld [vmem:[%s4998_s3 + $0x24] ss:$16 sps:$4 sm:$0xff]  }
  0x23   :  { %464 = vmatpush2.bf16.msra.mxu0 %v3320_v34  ;;  %505 = vmatpush2.bf16.msra.mxu1 %v3321_v35  ;;  %v3407_v28 = vld [vmem:[%s4998_s3 + $0x224] ss:$16 sps:$4 sm:$0xff]   ;;  %v3402_v29 = vld [vmem:[%s4998_s3 + $0x20] ss:$16 sps:$4 sm:$0xff]  }
  0x24   :  { %465 = vmatprep.subr.bf16.mxu0 %v3322_v36  ;;  %506 = vmatprep.subr.bf16.mxu1 %v3324_v37  ;;  %v3405_v30 = vld [vmem:[%s4998_s3 + $0x220] ss:$16 sps:$4 sm:$0xff]   ;;  %v3410_v31 = vld [vmem:[%s4998_s3 + $0x4] ss:$16 sps:$4 sm:$0xff]  }
  0x25   :  { %v3413_v32 = vld [vmem:[%s4998_s3 + $0x204] ss:$16 sps:$4 sm:$0xff]   ;;  %v3408_v33 = vld [vmem:[%s4998_s3] ss:$16 sps:$4 sm:$0xff]  }
  0x26   :  { %v3411_v34 = vld [vmem:[%s4998_s3 + $0x200] ss:$16 sps:$4 sm:$0xff]   ;;  %v3416_v35 = vld [vmem:[%s4998_s3 + $0x1e4] ss:$16 sps:$4 sm:$0xff]  }
  0x27   :  { %466 = vmatpush2.bf16.msra.mxu0 %v3326_v38  ;;  %507 = vmatpush2.bf16.msra.mxu1 %v3327_v39  ;;  %v3419_v36 = vld [vmem:[%s4998_s3 + $0x3e4] ss:$16 sps:$4 sm:$0xff]   ;;  %v3414_v37 = vld [vmem:[%s4998_s3 + $0x1e0] ss:$16 sps:$4 sm:$0xff]  }
  0x28   :  { %467 = vmatprep.subr.bf16.mxu0 %v3328_v40  ;;  %508 = vmatprep.subr.bf16.mxu1 %v3330_v41  ;;  %v3417_v38 = vld [vmem:[%s4998_s3 + $0x3e0] ss:$16 sps:$4 sm:$0xff]   ;;  %v3422_v39 = vld [vmem:[%s4998_s3 + $0x1c4] ss:$16 sps:$4 sm:$0xff]  }
  0x29   :  { %v3425_v40 = vld [vmem:[%s4998_s3 + $0x3c4] ss:$16 sps:$4 sm:$0xff]   ;;  %v3420_v41 = vld [vmem:[%s4998_s3 + $0x1c0] ss:$16 sps:$4 sm:$0xff]  }
  0x2a   :  { %v3429_v46 = vld [vmem:[%s4998_s3 + $0x3a0] ss:$16 sps:$4 sm:$0xff]   ;;  %v3437_v48 = vld [vmem:[%s4998_s3 + $0x384] ss:$16 sps:$4 sm:$0xff]  }
  0x2b   :  { %468 = vmatpush2.bf16.msra.mxu0 %v3332_v42  ;;  %509 = vmatpush2.bf16.msra.mxu1 %v3333_v43  ;;  %v3423_v42 = vld [vmem:[%s4998_s3 + $0x3c0] ss:$16 sps:$4 sm:$0xff]   ;;  %v3428_v43 = vld [vmem:[%s4998_s3 + $0x1a4] ss:$16 sps:$4 sm:$0xff]  }
  0x2c   :  { %469 = vmatprep.subr.bf16.mxu0 %v3334_v44  ;;  %510 = vmatprep.subr.bf16.mxu1 %v3336_v45  ;;  %v3431_v44 = vld [vmem:[%s4998_s3 + $0x3a4] ss:$16 sps:$4 sm:$0xff]   ;;  %v3426_v45 = vld [vmem:[%s4998_s3 + $0x1a0] ss:$16 sps:$4 sm:$0xff]  }
  0x2f   :  { %470 = vmatpush2.bf16.msra.mxu0 %v3338_v47  ;;  %511 = vmatpush2.bf16.msra.mxu1 %v3339_v49  ;;  %v3434_v47 = vld [vmem:[%s4998_s3 + $0x184] ss:$16 sps:$4 sm:$0xff]   ;;  %v3432_v49 = vld [vmem:[%s4998_s3 + $0x180] ss:$16 sps:$4 sm:$0xff]  }
  0x30   :  { %471 = vmatprep.subr.bf16.mxu0 %v3340_v50  ;;  %512 = vmatprep.subr.bf16.mxu1 %v3342_v51  ;;  %v3435_v50 = vld [vmem:[%s4998_s3 + $0x380] ss:$16 sps:$4 sm:$0xff]   ;;  %v3440_v51 = vld [vmem:[%s4998_s3 + $0x164] ss:$16 sps:$4 sm:$0xff]  }
  0x33   :  { %472 = vmatpush2.bf16.msra.mxu0 %v3344_v52  ;;  %513 = vmatpush2.bf16.msra.mxu1 %v3345_v53  ;;  %v3443_v52 = vld [vmem:[%s4998_s3 + $0x364] ss:$16 sps:$4 sm:$0xff]   ;;  %v3438_v53 = vld [vmem:[%s4998_s3 + $0x160] ss:$16 sps:$4 sm:$0xff]  }
  0x34   :  { %473 = vmatprep.subr.bf16.mxu0 %v3346_v54  ;;  %514 = vmatprep.subr.bf16.mxu1 %v3348_v55  ;;  %v3441_v54 = vld [vmem:[%s4998_s3 + $0x360] ss:$16 sps:$4 sm:$0xff]   ;;  %v3446_v55 = vld [vmem:[%s4998_s3 + $0x144] ss:$16 sps:$4 sm:$0xff]  }
  0x37   :  { %474 = vmatpush2.bf16.msra.mxu0 %v3350_v56  ;;  %515 = vmatpush2.bf16.msra.mxu1 %v3351_v57  ;;  %v3449_v56 = vld [vmem:[%s4998_s3 + $0x344] ss:$16 sps:$4 sm:$0xff]   ;;  %v3444_v57 = vld [vmem:[%s4998_s3 + $0x140] ss:$16 sps:$4 sm:$0xff]  }
  0x38   :  { %475 = vmatprep.subr.bf16.mxu0 %v3352_v58  ;;  %516 = vmatprep.subr.bf16.mxu1 %v3354_v59  ;;  %v3447_v58 = vld [vmem:[%s4998_s3 + $0x340] ss:$16 sps:$4 sm:$0xff]   ;;  %v3452_v59 = vld [vmem:[%s4998_s3 + $0x124] ss:$16 sps:$4 sm:$0xff]  }
  0x3b   :  { %476 = vmatpush2.bf16.msra.mxu0 %v3356_v60  ;;  %517 = vmatpush2.bf16.msra.mxu1 %v3357_v61  ;;  %v3455_v60 = vld [vmem:[%s4998_s3 + $0x324] ss:$16 sps:$4 sm:$0xff]   ;;  %v3450_v61 = vld [vmem:[%s4998_s3 + $0x120] ss:$16 sps:$4 sm:$0xff]  }
  0x3c   :  { %477 = vmatprep.subr.bf16.mxu0 %v3358_v62  ;;  %518 = vmatprep.subr.bf16.mxu1 %v3360_v63  ;;  %v3453_v62 = vld [vmem:[%s4998_s3 + $0x320] ss:$16 sps:$4 sm:$0xff]   ;;  %v3458_v63 = vld [vmem:[%s4998_s3 + $0x104] ss:$16 sps:$4 sm:$0xff]  }
  0x3f   :  { %478 = vmatpush2.bf16.msra.mxu0 %v3362_v0  ;;  %519 = vmatpush2.bf16.msra.mxu1 %v3363_v1  ;;  %v3461_v0 = vld [vmem:[%s4998_s3 + $0x304] ss:$16 sps:$4 sm:$0xff]   ;;  %v3456_v1 = vld [vmem:[%s4998_s3 + $0x100] ss:$16 sps:$4 sm:$0xff]  }
  0x40   :  { %1347 = vmatprep.subr.bf16.mxu0 %v3368_v2  ;;  %1388 = vmatprep.subr.bf16.mxu1 %v3371_v3  ;;  %v3459_v2 = vld [vmem:[%s4998_s3 + $0x300] ss:$16 sps:$4 sm:$0xff]   ;;  %v3464_v3 = vld [vmem:[%s4998_s3 + $0xec] ss:$16 sps:$4 sm:$0xff]  }
  0x42   :  { %480 = vmatmul.mubr.bf16.vlgmr.msra.gmra.mxu0 %v2869_v6  ;;  %521 = vmatmul.mubr.bf16.vlgmr.msra.gmra.mxu1 %v2869_v6 }
  0x43   :  { %1348 = vmatpush1.bf16.msra.mxu0 %v3366_v4  ;;  %1389 = vmatpush1.bf16.msra.mxu1 %v3369_v5  ;;  %v3467_v4 = vld [vmem:[%s4998_s3 + $0x2ec] ss:$16 sps:$4 sm:$0xff]   ;;  %v100_v5 = vlaneseq }
  0x44   :  { %1349 = vmatprep.subr.bf16.mxu0 %v3374_v7  ;;  %1390 = vmatprep.subr.bf16.mxu1 %v3377_v8  ;;  %v98_v7 = vld [vmem:[%s5000_s2] sm:$0xf] }
  0x45   :  { %v101_v6 = vshrl.u32 %v100_v5, 7  ;;  %v3483_v5 = vld [vmem:[%s4998_s3 + $0x288] ss:$16 sps:$4 sm:$0xff]  }
  0x47   :  { %1350 = vmatpush1.bf16.msra.mxu0 %v3372_v9  ;;  %1391 = vmatpush1.bf16.msra.mxu1 %v3375_v10  ;;  %v4276_v8 = vsub.s32 0, %v101_v6  ;;  %v4278_v9 = vsub.s32 2, %v101_v6  ;;  %v4280_v10 = vsub.s32 1, %v101_v6 }
  0x48   :  { %1351 = vmatprep.subr.bf16.mxu0 %v3380_v11  ;;  %1392 = vmatprep.subr.bf16.mxu1 %v3383_v12  ;;  %v4282_v11 = vsub.s32 3, %v101_v6  ;;  %v3488_v6 = vld [vmem:[%s4998_s3 + $0x6c] ss:$16 sps:$4 sm:$0xff]  }
  0x49   :  { %v103_v12 = vrot.slane %v98_v7, %v4276_v8 }
  0x4b   :  { %1352 = vmatpush1.bf16.msra.mxu0 %v3378_v13  ;;  %1393 = vmatpush1.bf16.msra.mxu1 %v3381_v14  ;;  %v111_v13 = vrot.slane %v98_v7, %v4278_v9  ;;  %v107_v14 = vrot.slane %v98_v7, %v4280_v10 }
  0x4c   :  { %1353 = vmatprep.subr.bf16.mxu0 %v3386_v15  ;;  %1394 = vmatprep.subr.bf16.mxu1 %v3389_v16  ;;  %v115_v15 = vrot.slane %v98_v7, %v4282_v11  ;;  %v3491_v7 = vld [vmem:[%s4998_s3 + $0x26c] ss:$16 sps:$4 sm:$0xff]  }
  0x4f   :  { %1354 = vmatpush1.bf16.msra.mxu0 %v3384_v17  ;;  %1395 = vmatpush1.bf16.msra.mxu1 %v3387_v18 }
  0x50   :  { %1355 = vmatprep.subr.bf16.mxu0 %v3392_v19  ;;  %1396 = vmatprep.subr.bf16.mxu1 %v3395_v20 }
  0x53   :  { %1356 = vmatpush1.bf16.msra.mxu0 %v3390_v21  ;;  %1397 = vmatpush1.bf16.msra.mxu1 %v3393_v22 }
  0x54   :  { %1357 = vmatprep.subr.bf16.mxu0 %v3398_v23  ;;  %1398 = vmatprep.subr.bf16.mxu1 %v3401_v24 }
  0x57   :  { %1358 = vmatpush1.bf16.msra.mxu0 %v3396_v25  ;;  %1399 = vmatpush1.bf16.msra.mxu1 %v3399_v26 }
  0x58   :  { %1359 = vmatprep.subr.bf16.mxu0 %v3404_v27  ;;  %1400 = vmatprep.subr.bf16.mxu1 %v3407_v28 }
  0x5b   :  { %1360 = vmatpush1.bf16.msra.mxu0 %v3402_v29  ;;  %1401 = vmatpush1.bf16.msra.mxu1 %v3405_v30 }
  0x5c   :  { %1361 = vmatprep.subr.bf16.mxu0 %v3410_v31  ;;  %1402 = vmatprep.subr.bf16.mxu1 %v3413_v32 }
  0x5f   :  { %1362 = vmatpush1.bf16.msra.mxu0 %v3408_v33  ;;  %1403 = vmatpush1.bf16.msra.mxu1 %v3411_v34 }
  0x60   :  { %1363 = vmatprep.subr.bf16.mxu0 %v3416_v35  ;;  %1404 = vmatprep.subr.bf16.mxu1 %v3419_v36 }
  0x63   :  { %1364 = vmatpush2.bf16.msra.mxu0 %v3414_v37  ;;  %1405 = vmatpush2.bf16.msra.mxu1 %v3417_v38 }
  0x64   :  { %1365 = vmatprep.subr.bf16.mxu0 %v3422_v39  ;;  %1406 = vmatprep.subr.bf16.mxu1 %v3425_v40 }
  0x67   :  { %1366 = vmatpush2.bf16.msra.mxu0 %v3420_v41  ;;  %1407 = vmatpush2.bf16.msra.mxu1 %v3423_v42 }
  0x68   :  { %1367 = vmatprep.subr.bf16.mxu0 %v3428_v43  ;;  %1408 = vmatprep.subr.bf16.mxu1 %v3431_v44 }
  0x6b   :  { %1368 = vmatpush2.bf16.msra.mxu0 %v3426_v45  ;;  %1409 = vmatpush2.bf16.msra.mxu1 %v3429_v46 }
  0x6c   :  { %1369 = vmatprep.subr.bf16.mxu0 %v3434_v47  ;;  %1410 = vmatprep.subr.bf16.mxu1 %v3437_v48 }
  0x6f   :  { %1370 = vmatpush2.bf16.msra.mxu0 %v3432_v49  ;;  %1411 = vmatpush2.bf16.msra.mxu1 %v3435_v50 }
  0x70   :  { %1371 = vmatprep.subr.bf16.mxu0 %v3440_v51  ;;  %1412 = vmatprep.subr.bf16.mxu1 %v3443_v52 }
  0x73   :  { %1372 = vmatpush2.bf16.msra.mxu0 %v3438_v53  ;;  %1413 = vmatpush2.bf16.msra.mxu1 %v3441_v54  ;;  %v3462_v53 = vld [vmem:[%s4998_s3 + $0xe8] ss:$16 sps:$4 sm:$0xff]  }
  0x74   :  { %1373 = vmatprep.subr.bf16.mxu0 %v3446_v55  ;;  %1414 = vmatprep.subr.bf16.mxu1 %v3449_v56  ;;  %v3465_v56 = vld [vmem:[%s4998_s3 + $0x2e8] ss:$16 sps:$4 sm:$0xff]  }
  0x77   :  { %1374 = vmatpush2.bf16.msra.mxu0 %v3444_v57  ;;  %1415 = vmatpush2.bf16.msra.mxu1 %v3447_v58  ;;  %v3470_v58 = vld [vmem:[%s4998_s3 + $0xcc] ss:$16 sps:$4 sm:$0xff]  }
  0x78   :  { %1375 = vmatprep.subr.bf16.mxu0 %v3452_v59  ;;  %1416 = vmatprep.subr.bf16.mxu1 %v3455_v60  ;;  %v3473_v59 = vld [vmem:[%s4998_s3 + $0x2cc] ss:$16 sps:$4 sm:$0xff]   ;;  %v3468_v60 = vld [vmem:[%s4998_s3 + $0xc8] ss:$16 sps:$4 sm:$0xff]  }
  0x7b   :  { %1376 = vmatpush2.bf16.msra.mxu0 %v3450_v61  ;;  %1417 = vmatpush2.bf16.msra.mxu1 %v3453_v62  ;;  %v3471_v61 = vld [vmem:[%s4998_s3 + $0x2c8] ss:$16 sps:$4 sm:$0xff]   ;;  %v3476_v62 = vld [vmem:[%s4998_s3 + $0xac] ss:$16 sps:$4 sm:$0xff]  }
  0x7c   :  { %1377 = vmatprep.subr.bf16.mxu0 %v3458_v63  ;;  %1418 = vmatprep.subr.bf16.mxu1 %v3461_v0  ;;  %v3479_v63 = vld [vmem:[%s4998_s3 + $0x2ac] ss:$16 sps:$4 sm:$0xff]   ;;  %v3474_v0 = vld [vmem:[%s4998_s3 + $0xa8] ss:$16 sps:$4 sm:$0xff]  }
  0x7f   :  { %1378 = vmatpush2.bf16.msra.mxu0 %v3456_v1  ;;  %1419 = vmatpush2.bf16.msra.mxu1 %v3459_v2  ;;  %v3477_v1 = vld [vmem:[%s4998_s3 + $0x2a8] ss:$16 sps:$4 sm:$0xff]   ;;  %v3482_v2 = vld [vmem:[%s4998_s3 + $0x8c] ss:$16 sps:$4 sm:$0xff]  }
  0x80   :  { %1429 = vmatprep.subr.bf16.mxu0 %v3464_v3  ;;  %1470 = vmatprep.subr.bf16.mxu1 %v3467_v4  ;;  %v3485_v3 = vld [vmem:[%s4998_s3 + $0x28c] ss:$16 sps:$4 sm:$0xff]   ;;  %v3480_v4 = vld [vmem:[%s4998_s3 + $0x88] ss:$16 sps:$4 sm:$0xff]  }
 0x102   :  { %v481_v16 = vpop.f32.mrf.mxu0  ;;  %v522_v17 = vpop.f32.mrf.mxu1 }
 0x103   :  { %v482_v18 = vadd.f32 %v481_v16, %v103_v12  ;;  %v523_v19 = vadd.f32 %v522_v17, %v111_v13  ;;  %v3486_v12 = vld [vmem:[%s4998_s3 + $0x68] ss:$16 sps:$4 sm:$0xff]  }
 0x104   :  { %v483_v20 = vpop.f32.mrf.mxu0  ;;  %v524_v21 = vpop.f32.mrf.mxu1  ;;  %v3489_v13 = vld [vmem:[%s4998_s3 + $0x268] ss:$16 sps:$4 sm:$0xff]  }
 0x105   :  { %v529_v22 = vsub.f32 0.0, %v482_v18  ;;  %v531_v23 = vsub.f32 0.0, %v523_v19  ;;  %v484_v24 = vadd.f32 %v483_v20, %v107_v14  ;;  %v525_v25 = vadd.f32 %v524_v21, %v115_v15  ;;  %v3494_v14 = vld [vmem:[%s4998_s3 + $0x4c] ss:$16 sps:$4 sm:$0xff]   ;;  %v3492_v16 = vld [vmem:[%s4998_s3 + $0x48] ss:$16 sps:$4 sm:$0xff]  }
 0x106   :  { %v485_v26 = vpop.f32.mrf.mxu0  ;;  %v526_v27 = vpop.f32.mrf.mxu1  ;;  %v3497_v15 = vld [vmem:[%s4998_s3 + $0x24c] ss:$16 sps:$4 sm:$0xff]   ;;  %v3495_v17 = vld [vmem:[%s4998_s3 + $0x248] ss:$16 sps:$4 sm:$0xff]  }
 0x107   :  { %v533_v28 = vmul.f32 1.442695, %v529_v22  ;;  %v537_v29 = vmul.f32 1.442695, %v531_v23  ;;  %v530_v30 = vsub.f32 0.0, %v484_v24  ;;  %v532_v31 = vsub.f32 0.0, %v525_v25 }
 0x108   :  { %v486_v32 = vpop.f32.mrf.mxu0  ;;  %v527_v33 = vpop.f32.mrf.mxu1  ;;  %v3498_v20 = vld [vmem:[%s4998_s3 + $0x28] ss:$16 sps:$4 sm:$0xff]   ;;  %v3506_v22 = vld [vmem:[%s4998_s3 + $0xc] ss:$16 sps:$4 sm:$0xff]  }
 0x109   :  { %3782 = vpow2.f32 %v533_v28  ;;  %v535_v34 = vmul.f32 1.442695, %v530_v30  ;;  %v539_v35 = vmul.f32 1.442695, %v532_v31  ;;  %v3501_v21 = vld [vmem:[%s4998_s3 + $0x228] ss:$16 sps:$4 sm:$0xff]  }
 0x10a   :  { %3784 = vpow2.f32 %v537_v29  ;;  %v3509_v23 = vld [vmem:[%s4998_s3 + $0x20c] ss:$16 sps:$4 sm:$0xff]   ;;  %v3510_v28 = vld [vmem:[%s4998_s3 + $0x1e8] ss:$16 sps:$4 sm:$0xff]  }
 0x10b   :  { %3786 = vpow2.f32 %v535_v34  ;;  %v3512_v26 = vld [vmem:[%s4998_s3 + $0x1ec] ss:$16 sps:$4 sm:$0xff]   ;;  %v3513_v29 = vld [vmem:[%s4998_s3 + $0x3e8] ss:$16 sps:$4 sm:$0xff]  }
 0x10c   :  { %3788 = vpow2.f32 %v539_v35  ;;  %v3515_v27 = vld [vmem:[%s4998_s3 + $0x3ec] ss:$16 sps:$4 sm:$0xff]   ;;  %v3516_v32 = vld [vmem:[%s4998_s3 + $0x1c8] ss:$16 sps:$4 sm:$0xff]  }
 0x10d   :  { %v3518_v30 = vld [vmem:[%s4998_s3 + $0x1cc] ss:$16 sps:$4 sm:$0xff]   ;;  %v3519_v33 = vld [vmem:[%s4998_s3 + $0x3c8] ss:$16 sps:$4 sm:$0xff]  }
 0x10e   :  { %v3521_v31 = vld [vmem:[%s4998_s3 + $0x3cc] ss:$16 sps:$4 sm:$0xff]  }
 0x10f   :  { %v3524_v34 = vld [vmem:[%s4998_s3 + $0x1ac] ss:$16 sps:$4 sm:$0xff]  }
 0x110   :  { %v3527_v35 = vld [vmem:[%s4998_s3 + $0x3ac] ss:$16 sps:$4 sm:$0xff]  }
 0x116   :  { %v3783_v36 = vpop.eup %3782 }
 0x117   :  { %v3785_v37 = vpop.eup %3784  ;;  %v541_v38 = vadd.f32 1.0, %v3783_v36  ;;  %v3522_v36 = vld [vmem:[%s4998_s3 + $0x1a8] ss:$16 sps:$4 sm:$0xff]  }
 0x118   :  { %v3787_v39 = vpop.eup %3786  ;;  %v543_v40 = vadd.f32 1.0, %v3785_v37  ;;  %v3525_v37 = vld [vmem:[%s4998_s3 + $0x3a8] ss:$16 sps:$4 sm:$0xff]  }
 0x119   :  { %v3789_v41 = vpop.eup %3788  ;;  %3790 = vrcp.f32 %v541_v38  ;;  %v542_v42 = vadd.f32 1.0, %v3787_v39  ;;  %v3530_v38 = vld [vmem:[%s4998_s3 + $0x18c] ss:$16 sps:$4 sm:$0xff]  }
 0x11a   :  { %3792 = vrcp.f32 %v543_v40  ;;  %v544_v43 = vadd.f32 1.0, %v3789_v41  ;;  %v3533_v39 = vld [vmem:[%s4998_s3 + $0x38c] ss:$16 sps:$4 sm:$0xff]   ;;  %v3528_v40 = vld [vmem:[%s4998_s3 + $0x188] ss:$16 sps:$4 sm:$0xff]  }
 0x11b   :  { %3794 = vrcp.f32 %v542_v42  ;;  %v3531_v41 = vld [vmem:[%s4998_s3 + $0x388] ss:$16 sps:$4 sm:$0xff]   ;;  %v3536_v42 = vld [vmem:[%s4998_s3 + $0x16c] ss:$16 sps:$4 sm:$0xff]  }
 0x11c   :  { %3796 = vrcp.f32 %v544_v43  ;;  %v3539_v43 = vld [vmem:[%s4998_s3 + $0x36c] ss:$16 sps:$4 sm:$0xff]  }
 0x126   :  { %v3791_v44 = vpop.eup %3790 }
 0x127   :  { %v3793_v45 = vpop.eup %3792  ;;  %v549_v47 = vmul.f32 %v3791_v44, %v482_v18  ;;  %v3500_v18 = vld [vmem:[%s4998_s3 + $0x2c] ss:$16 sps:$4 sm:$0xff]   ;;  %v3534_v44 = vld [vmem:[%s4998_s3 + $0x168] ss:$16 sps:$4 sm:$0xff]  }
 0x128   :  { %v3795_v46 = vpop.eup %3794  ;;  %v551_v49 = vmul.f32 %v3793_v45, %v523_v19  ;;  %v3503_v19 = vld [vmem:[%s4998_s3 + $0x22c] ss:$16 sps:$4 sm:$0xff]   ;;  %v3537_v45 = vld [vmem:[%s4998_s3 + $0x368] ss:$16 sps:$4 sm:$0xff]  }
 0x129   :  { %v3797_v48 = vpop.eup %3796  ;;  %v550_v50 = vmul.f32 %v3795_v46, %v484_v24  ;;  %v4291_v54 = vpack.c.bf16 %v549_v47, %v549_v47  ;;  %v3504_v24 = vld [vmem:[%s4998_s3 + $0x8] ss:$16 sps:$4 sm:$0xff]   ;;  %v3542_v46 = vld [vmem:[%s4998_s3 + $0x14c] ss:$16 sps:$4 sm:$0xff]  }
 0x12a   :  { %v552_v51 = vmul.f32 %v3797_v48, %v525_v25  ;;  %v4296_v57 = vpack.c.bf16 %v551_v49, %v551_v49  ;;  %v3507_v25 = vld [vmem:[%s4998_s3 + $0x208] ss:$16 sps:$4 sm:$0xff]   ;;  %v3545_v47 = vld [vmem:[%s4998_s3 + $0x34c] ss:$16 sps:$4 sm:$0xff]  }
 0x12b   :  { %v554_v52 = vpack.c.bf16 %v550_v50, %v550_v50  ;;  %v3540_v48 = vld [vmem:[%s4998_s3 + $0x148] ss:$16 sps:$4 sm:$0xff]   ;;  %v3548_v50 = vld [vmem:[%s4998_s3 + $0x12c] ss:$16 sps:$4 sm:$0xff]  }
 0x12c   :  { %v556_v55 = vpack.c.bf16 %v552_v51, %v552_v51  ;;  %v3543_v49 = vld [vmem:[%s4998_s3 + $0x348] ss:$16 sps:$4 sm:$0xff]   ;;  %v3551_v51 = vld [vmem:[%s4998_s3 + $0x32c] ss:$16 sps:$4 sm:$0xff]  }
 0x12d   :  { %1379 = vmatprep.mubr.bf16.mxu0 %v554_v52 }
 0x12e   :  { %1420 = vmatprep.mubr.bf16.mxu1 %v556_v55  ;;  %1380 = vmatmul.mubr.bf16.vlgmr.msra.gmra.mxu0 %v4291_v54 }
 0x12f   :  { %1421 = vmatmul.mubr.bf16.vlgmr.msra.gmra.mxu1 %v4296_v57  ;;  %1430 = vmatpush1.bf16.msra.mxu0 %v3462_v53  ;;  %v3549_v53 = vld [vmem:[%s4998_s3 + $0x328] ss:$16 sps:$4 sm:$0xff]  }
 0x130   :  { %1471 = vmatpush1.bf16.msra.mxu1 %v3465_v56  ;;  %1461 = vmatprep.mubr.bf16.mxu0 %v554_v52  ;;  %v3546_v52 = vld [vmem:[%s4998_s3 + $0x128] ss:$16 sps:$4 sm:$0xff]   ;;  %v3557_v56 = vld [vmem:[%s4998_s3 + $0x30c] ss:$16 sps:$4 sm:$0xff]  }
 0x131   :  { %1502 = vmatprep.mubr.bf16.mxu1 %v556_v55  ;;  %1431 = vmatprep.subr.bf16.mxu0 %v3470_v58  ;;  %v3554_v55 = vld [vmem:[%s4998_s3 + $0x10c] ss:$16 sps:$4 sm:$0xff]   ;;  %v3552_v58 = vld [vmem:[%s4998_s3 + $0x108] ss:$16 sps:$4 sm:$0xff]  }
 0x132   :  { %1472 = vmatprep.subr.bf16.mxu1 %v3473_v59  ;;  %v3555_v59 = vld [vmem:[%s4998_s3 + $0x308] ss:$16 sps:$4 sm:$0xff]  }
 0x133   :  { %1432 = vmatpush1.bf16.msra.mxu0 %v3468_v60  ;;  %v3560_v60 = vld [vmem:[%s4999_s5 + $0xe4] ss:$16 sps:$4 sm:$0xff]  }
 0x134   :  { %1473 = vmatpush1.bf16.msra.mxu1 %v3471_v61  ;;  %1433 = vmatprep.subr.bf16.mxu0 %v3476_v62  ;;  %v3558_v61 = vld [vmem:[%s4999_s5 + $0xe0] ss:$16 sps:$4 sm:$0xff]   ;;  %v3563_v62 = vld [vmem:[%s4999_s5 + $0xc4] ss:$16 sps:$4 sm:$0xff]  }
 0x135   :  { %1474 = vmatprep.subr.bf16.mxu1 %v3479_v63  ;;  %v3561_v63 = vld [vmem:[%s4999_s5 + $0xc0] ss:$16 sps:$4 sm:$0xff]  }
 0x137   :  { %1434 = vmatpush1.bf16.msra.mxu0 %v3474_v0  ;;  %v3566_v0 = vld [vmem:[%s4999_s5 + $0xa4] ss:$16 sps:$4 sm:$0xff]  }
 0x138   :  { %1475 = vmatpush1.bf16.msra.mxu1 %v3477_v1  ;;  %1435 = vmatprep.subr.bf16.mxu0 %v3482_v2  ;;  %v3564_v1 = vld [vmem:[%s4999_s5 + $0xa0] ss:$16 sps:$4 sm:$0xff]   ;;  %v3572_v2 = vld [vmem:[%s4999_s5 + $0x64] ss:$16 sps:$4 sm:$0xff]  }
 0x139   :  { %1476 = vmatprep.subr.bf16.mxu1 %v3485_v3  ;;  %v3570_v3 = vld [vmem:[%s4999_s5 + $0x60] ss:$16 sps:$4 sm:$0xff]  }
 0x13b   :  { %1436 = vmatpush1.bf16.msra.mxu0 %v3480_v4  ;;  %v3575_v4 = vld [vmem:[%s4999_s5 + $0x44] ss:$16 sps:$4 sm:$0xff]  }
 0x13c   :  { %1477 = vmatpush1.bf16.msra.mxu1 %v3483_v5  ;;  %1437 = vmatprep.subr.bf16.mxu0 %v3488_v6  ;;  %v3573_v5 = vld [vmem:[%s4999_s5 + $0x40] ss:$16 sps:$4 sm:$0xff]   ;;  %v3578_v6 = vld [vmem:[%s4999_s5 + $0x24] ss:$16 sps:$4 sm:$0xff]  }
 0x13d   :  { %1478 = vmatprep.subr.bf16.mxu1 %v3491_v7  ;;  %v3576_v7 = vld [vmem:[%s4999_s5 + $0x20] ss:$16 sps:$4 sm:$0xff]  }
 0x13f   :  { %1438 = vmatpush1.bf16.msra.mxu0 %v3486_v12  ;;  %v3581_v12 = vld [vmem:[%s4999_s5 + $0x4] ss:$16 sps:$4 sm:$0xff]  }
 0x140   :  { %1479 = vmatpush1.bf16.msra.mxu1 %v3489_v13  ;;  %1439 = vmatprep.subr.bf16.mxu0 %v3494_v14  ;;  %v3579_v13 = vld [vmem:[%s4999_s5] ss:$16 sps:$4 sm:$0xff]   ;;  %v3584_v14 = vld [vmem:[%s4999_s5 + $0x1e4] ss:$16 sps:$4 sm:$0xff]  }
 0x141   :  { %1480 = vmatprep.subr.bf16.mxu1 %v3497_v15  ;;  %v3582_v15 = vld [vmem:[%s4999_s5 + $0x1e0] ss:$16 sps:$4 sm:$0xff]  }
 0x143   :  { %1440 = vmatpush1.bf16.msra.mxu0 %v3492_v16  ;;  %v3587_v16 = vld [vmem:[%s4999_s5 + $0x1c4] ss:$16 sps:$4 sm:$0xff]  }
 0x144   :  { %1481 = vmatpush1.bf16.msra.mxu1 %v3495_v17  ;;  %1441 = vmatprep.subr.bf16.mxu0 %v3500_v18  ;;  %v3585_v17 = vld [vmem:[%s4999_s5 + $0x1c0] ss:$16 sps:$4 sm:$0xff]   ;;  %v3590_v18 = vld [vmem:[%s4999_s5 + $0x1a4] ss:$16 sps:$4 sm:$0xff]  }
 0x145   :  { %1482 = vmatprep.subr.bf16.mxu1 %v3503_v19  ;;  %v3588_v19 = vld [vmem:[%s4999_s5 + $0x1a0] ss:$16 sps:$4 sm:$0xff]  }
 0x147   :  { %1442 = vmatpush1.bf16.msra.mxu0 %v3498_v20  ;;  %v3593_v20 = vld [vmem:[%s4999_s5 + $0x184] ss:$16 sps:$4 sm:$0xff]  }
 0x148   :  { %1483 = vmatpush1.bf16.msra.mxu1 %v3501_v21  ;;  %1443 = vmatprep.subr.bf16.mxu0 %v3506_v22  ;;  %v3591_v21 = vld [vmem:[%s4999_s5 + $0x180] ss:$16 sps:$4 sm:$0xff]   ;;  %v3596_v22 = vld [vmem:[%s4999_s5 + $0x164] ss:$16 sps:$4 sm:$0xff]  }
 0x149   :  { %1484 = vmatprep.subr.bf16.mxu1 %v3509_v23  ;;  %v3606_v23 = vld [vmem:[%s4999_s5 + $0x2e0] ss:$16 sps:$4 sm:$0xff]  }
 0x14b   :  { %1444 = vmatpush1.bf16.msra.mxu0 %v3504_v24  ;;  %v3608_v24 = vld [vmem:[%s4999_s5 + $0x2e4] ss:$16 sps:$4 sm:$0xff]  }
 0x14c   :  { %1485 = vmatpush1.bf16.msra.mxu1 %v3507_v25  ;;  %1445 = vmatprep.subr.bf16.mxu0 %v3512_v26  ;;  %v3594_v25 = vld [vmem:[%s4999_s5 + $0x160] ss:$16 sps:$4 sm:$0xff]   ;;  %v3599_v26 = vld [vmem:[%s4999_s5 + $0x144] ss:$16 sps:$4 sm:$0xff]  }
 0x14d   :  { %1486 = vmatprep.subr.bf16.mxu1 %v3515_v27  ;;  %v3612_v27 = vld [vmem:[%s4999_s5 + $0x2c0] ss:$16 sps:$4 sm:$0xff]  }
 0x14f   :  { %1446 = vmatpush2.bf16.msra.mxu0 %v3510_v28  ;;  %v3614_v28 = vld [vmem:[%s4999_s5 + $0x2c4] ss:$16 sps:$4 sm:$0xff]  }
 0x150   :  { %1487 = vmatpush2.bf16.msra.mxu1 %v3513_v29  ;;  %1447 = vmatprep.subr.bf16.mxu0 %v3518_v30  ;;  %v3597_v29 = vld [vmem:[%s4999_s5 + $0x140] ss:$16 sps:$4 sm:$0xff]   ;;  %v3602_v30 = vld [vmem:[%s4999_s5 + $0x124] ss:$16 sps:$4 sm:$0xff]  }
 0x151   :  { %1488 = vmatprep.subr.bf16.mxu1 %v3521_v31  ;;  %v3618_v31 = vld [vmem:[%s4999_s5 + $0x2a0] ss:$16 sps:$4 sm:$0xff]  }
 0x153   :  { %1448 = vmatpush2.bf16.msra.mxu0 %v3516_v32  ;;  %v3620_v32 = vld [vmem:[%s4999_s5 + $0x2a4] ss:$16 sps:$4 sm:$0xff]  }
 0x154   :  { %1489 = vmatpush2.bf16.msra.mxu1 %v3519_v33  ;;  %1449 = vmatprep.subr.bf16.mxu0 %v3524_v34  ;;  %v3600_v33 = vld [vmem:[%s4999_s5 + $0x120] ss:$16 sps:$4 sm:$0xff]   ;;  %v3605_v34 = vld [vmem:[%s4999_s5 + $0x104] ss:$16 sps:$4 sm:$0xff]  }
 0x155   :  { %1490 = vmatprep.subr.bf16.mxu1 %v3527_v35  ;;  %v3624_v35 = vld [vmem:[%s4999_s5 + $0x280] ss:$16 sps:$4 sm:$0xff]  }
 0x157   :  { %1450 = vmatpush2.bf16.msra.mxu0 %v3522_v36  ;;  %v3626_v36 = vld [vmem:[%s4999_s5 + $0x284] ss:$16 sps:$4 sm:$0xff]  }
 0x158   :  { %1491 = vmatpush2.bf16.msra.mxu1 %v3525_v37  ;;  %1451 = vmatprep.subr.bf16.mxu0 %v3530_v38  ;;  %v3603_v37 = vld [vmem:[%s4999_s5 + $0x100] ss:$16 sps:$4 sm:$0xff]   ;;  %v3611_v38 = vld [vmem:[%s4999_s5 + $0xec] ss:$16 sps:$4 sm:$0xff]  }
 0x159   :  { %1492 = vmatprep.subr.bf16.mxu1 %v3533_v39  ;;  %v3630_v39 = vld [vmem:[%s4999_s5 + $0x260] ss:$16 sps:$4 sm:$0xff]  }
 0x15b   :  { %1452 = vmatpush2.bf16.msra.mxu0 %v3528_v40  ;;  %v3632_v40 = vld [vmem:[%s4999_s5 + $0x264] ss:$16 sps:$4 sm:$0xff]  }
 0x15c   :  { %1493 = vmatpush2.bf16.msra.mxu1 %v3531_v41  ;;  %1453 = vmatprep.subr.bf16.mxu0 %v3536_v42  ;;  %v3638_v41 = vld [vmem:[%s4999_s5 + $0x244] ss:$16 sps:$4 sm:$0xff]   ;;  %v3636_v42 = vld [vmem:[%s4999_s5 + $0x240] ss:$16 sps:$4 sm:$0xff]  }
 0x15d   :  { %1494 = vmatprep.subr.bf16.mxu1 %v3539_v43  ;;  %v3644_v43 = vld [vmem:[%s4999_s5 + $0x224] ss:$16 sps:$4 sm:$0xff]  }
 0x15f   :  { %1454 = vmatpush2.bf16.msra.mxu0 %v3534_v44  ;;  %v3642_v44 = vld [vmem:[%s4999_s5 + $0x220] ss:$16 sps:$4 sm:$0xff]  }
 0x160   :  { %1495 = vmatpush2.bf16.msra.mxu1 %v3537_v45  ;;  %1455 = vmatprep.subr.bf16.mxu0 %v3542_v46  ;;  %v3650_v45 = vld [vmem:[%s4999_s5 + $0x204] ss:$16 sps:$4 sm:$0xff]   ;;  %v3648_v46 = vld [vmem:[%s4999_s5 + $0x200] ss:$16 sps:$4 sm:$0xff]  }
 0x161   :  { %1496 = vmatprep.subr.bf16.mxu1 %v3545_v47  ;;  %v3656_v47 = vld [vmem:[%s4999_s5 + $0x3e4] ss:$16 sps:$4 sm:$0xff]  }
 0x163   :  { %1456 = vmatpush2.bf16.msra.mxu0 %v3540_v48  ;;  %v3654_v48 = vld [vmem:[%s4999_s5 + $0x3e0] ss:$16 sps:$4 sm:$0xff]  }
 0x164   :  { %1497 = vmatpush2.bf16.msra.mxu1 %v3543_v49  ;;  %1457 = vmatprep.subr.bf16.mxu0 %v3548_v50  ;;  %v3662_v49 = vld [vmem:[%s4999_s5 + $0x3c4] ss:$16 sps:$4 sm:$0xff]   ;;  %v3660_v50 = vld [vmem:[%s4999_s5 + $0x3c0] ss:$16 sps:$4 sm:$0xff]  }
 0x165   :  { %1498 = vmatprep.subr.bf16.mxu1 %v3551_v51  ;;  %v3668_v51 = vld [vmem:[%s4999_s5 + $0x3a4] ss:$16 sps:$4 sm:$0xff]  }
 0x167   :  { %1458 = vmatpush2.bf16.msra.mxu0 %v3546_v52  ;;  %v3666_v52 = vld [vmem:[%s4999_s5 + $0x3a0] ss:$16 sps:$4 sm:$0xff]  }
 0x168   :  { %1499 = vmatpush2.bf16.msra.mxu1 %v3549_v53  ;;  %1459 = vmatprep.subr.bf16.mxu0 %v3554_v55  ;;  %v3674_v53 = vld [vmem:[%s4999_s5 + $0x384] ss:$16 sps:$4 sm:$0xff]   ;;  %v3672_v55 = vld [vmem:[%s4999_s5 + $0x380] ss:$16 sps:$4 sm:$0xff]  }
 0x169   :  { %1500 = vmatprep.subr.bf16.mxu1 %v3557_v56  ;;  %v3680_v56 = vld [vmem:[%s4999_s5 + $0x364] ss:$16 sps:$4 sm:$0xff]  }
 0x16b   :  { %1460 = vmatpush2.bf16.msra.mxu0 %v3552_v58  ;;  %v3678_v58 = vld [vmem:[%s4999_s5 + $0x360] ss:$16 sps:$4 sm:$0xff]  }
 0x16c   :  { %1501 = vmatpush2.bf16.msra.mxu1 %v3555_v59  ;;  %2329 = vmatprep.subr.bf16.mxu0 %v3560_v60  ;;  %v3686_v59 = vld [vmem:[%s4999_s5 + $0x344] ss:$16 sps:$4 sm:$0xff]   ;;  %v3684_v60 = vld [vmem:[%s4999_s5 + $0x340] ss:$16 sps:$4 sm:$0xff]  }
 0x16d   :  { %2370 = vmatprep.subr.bf16.mxu1 %v3608_v24 }
 0x16e   :  { %1462 = vmatmul.mubr.bf16.vlgmr.msra.gmra.mxu0 %v4291_v54  ;;  %v3569_v54 = vld [vmem:[%s4999_s5 + $0x84] ss:$16 sps:$4 sm:$0xff]  }
 0x16f   :  { %1503 = vmatmul.mubr.bf16.vlgmr.msra.gmra.mxu1 %v4296_v57  ;;  %2330 = vmatpush1.bf16.msra.mxu0 %v3558_v61  ;;  %v3567_v57 = vld [vmem:[%s4999_s5 + $0x80] ss:$16 sps:$4 sm:$0xff]   ;;  %v3692_v61 = vld [vmem:[%s4999_s5 + $0x324] ss:$16 sps:$4 sm:$0xff]  }
 0x170   :  { %2331 = vmatprep.subr.bf16.mxu0 %v3563_v62  ;;  %2371 = vmatpush1.bf16.msra.mxu1 %v3606_v23  ;;  %v3690_v62 = vld [vmem:[%s4999_s5 + $0x320] ss:$16 sps:$4 sm:$0xff]  }
 0x171   :  { %2372 = vmatprep.subr.bf16.mxu1 %v3614_v28 }
 0x173   :  { %2332 = vmatpush1.bf16.msra.mxu0 %v3561_v63  ;;  %v3698_v63 = vld [vmem:[%s4999_s5 + $0x304] ss:$16 sps:$4 sm:$0xff]  }
 0x174   :  { %2333 = vmatprep.subr.bf16.mxu0 %v3566_v0  ;;  %2373 = vmatpush1.bf16.msra.mxu1 %v3612_v27  ;;  %v3696_v0 = vld [vmem:[%s4999_s5 + $0x300] ss:$16 sps:$4 sm:$0xff]  }
 0x175   :  { %2374 = vmatprep.subr.bf16.mxu1 %v3620_v32  ;;  %v3609_v32 = vld [vmem:[%s4999_s5 + $0xe8] ss:$16 sps:$4 sm:$0xff]  }
 0x177   :  { %2334 = vmatpush1.bf16.msra.mxu0 %v3564_v1  ;;  %v3704_v1 = vld [vmem:[%s4999_s5 + $0x2ec] ss:$16 sps:$4 sm:$0xff]  }
 0x178   :  { %2335 = vmatprep.subr.bf16.mxu0 %v3569_v54  ;;  %2375 = vmatpush1.bf16.msra.mxu1 %v3618_v31  ;;  %v4683_v54 = vld [vmem:[%s5001_s4] sm:$0xf] }
 0x179   :  { %2376 = vmatprep.subr.bf16.mxu1 %v3626_v36  ;;  %v3623_v36 = vld [vmem:[%s4999_s5 + $0xac] ss:$16 sps:$4 sm:$0xff]  }
 0x17b   :  { %2336 = vmatpush1.bf16.msra.mxu0 %v3567_v57  ;;  %v690_v57 = vrot.slane %v4683_v54, %v4276_v8 }
 0x17c   :  { %2337 = vmatprep.subr.bf16.mxu0 %v3572_v2  ;;  %2377 = vmatpush1.bf16.msra.mxu1 %v3624_v35  ;;  %v694_v2 = vrot.slane %v4683_v54, %v4280_v10  ;;  %v3615_v35 = vld [vmem:[%s4999_s5 + $0xc8] ss:$16 sps:$4 sm:$0xff]  }
 0x17d   :  { %2378 = vmatprep.subr.bf16.mxu1 %v3632_v40  ;;  %v3635_v40 = vld [vmem:[%s4999_s5 + $0x6c] ss:$16 sps:$4 sm:$0xff]  }
 0x17f   :  { %2338 = vmatpush1.bf16.msra.mxu0 %v3570_v3 }
 0x180   :  { %2339 = vmatprep.subr.bf16.mxu0 %v3575_v4  ;;  %2379 = vmatpush1.bf16.msra.mxu1 %v3630_v39  ;;  %v3627_v39 = vld [vmem:[%s4999_s5 + $0x88] ss:$16 sps:$4 sm:$0xff]  }
 0x181   :  { %2380 = vmatprep.subr.bf16.mxu1 %v3638_v41  ;;  %v3633_v41 = vld [vmem:[%s4999_s5 + $0x68] ss:$16 sps:$4 sm:$0xff]  }
 0x183   :  { %2340 = vmatpush1.bf16.msra.mxu0 %v3573_v5 }
 0x184   :  { %2341 = vmatprep.subr.bf16.mxu0 %v3578_v6  ;;  %2381 = vmatpush1.bf16.msra.mxu1 %v3636_v42  ;;  %v3641_v42 = vld [vmem:[%s4999_s5 + $0x4c] ss:$16 sps:$4 sm:$0xff]  }
 0x185   :  { %2382 = vmatprep.subr.bf16.mxu1 %v3644_v43  ;;  %v698_v43 = vrot.slane %v4683_v54, %v4278_v9 }
 0x187   :  { %2342 = vmatpush1.bf16.msra.mxu0 %v3576_v7 }
 0x188   :  { %2343 = vmatprep.subr.bf16.mxu0 %v3581_v12  ;;  %2383 = vmatpush1.bf16.msra.mxu1 %v3642_v44  ;;  %v702_v44 = vrot.slane %v4683_v54, %v4282_v11  ;;  %v3651_v54 = vld [vmem:[%s4999_s5 + $0x8] ss:$16 sps:$4 sm:$0xff]  }
 0x189   :  { %2384 = vmatprep.subr.bf16.mxu1 %v3650_v45  ;;  %v3639_v45 = vld [vmem:[%s4999_s5 + $0x48] ss:$16 sps:$4 sm:$0xff]  }
 0x18b   :  { %2344 = vmatpush1.bf16.msra.mxu0 %v3579_v13 }
 0x18c   :  { %2345 = vmatprep.subr.bf16.mxu0 %v3584_v14  ;;  %2385 = vmatpush1.bf16.msra.mxu1 %v3648_v46 }
 0x18d   :  { %2386 = vmatprep.subr.bf16.mxu1 %v3656_v47  ;;  %v3647_v47 = vld [vmem:[%s4999_s5 + $0x2c] ss:$16 sps:$4 sm:$0xff]  }
 0x18f   :  { %2346 = vmatpush2.bf16.msra.mxu0 %v3582_v15 }
 0x190   :  { %2347 = vmatprep.subr.bf16.mxu0 %v3587_v16  ;;  %2387 = vmatpush2.bf16.msra.mxu1 %v3654_v48 }
 0x191   :  { %2388 = vmatprep.subr.bf16.mxu1 %v3662_v49 }
 0x193   :  { %2348 = vmatpush2.bf16.msra.mxu0 %v3585_v17 }
 0x194   :  { %2349 = vmatprep.subr.bf16.mxu0 %v3590_v18  ;;  %2389 = vmatpush2.bf16.msra.mxu1 %v3660_v50 }
 0x195   :  { %2390 = vmatprep.subr.bf16.mxu1 %v3668_v51 }
 0x197   :  { %2350 = vmatpush2.bf16.msra.mxu0 %v3588_v19 }
 0x198   :  { %2351 = vmatprep.subr.bf16.mxu0 %v3593_v20  ;;  %2391 = vmatpush2.bf16.msra.mxu1 %v3666_v52 }
 0x199   :  { %2392 = vmatprep.subr.bf16.mxu1 %v3674_v53 }
 0x19b   :  { %2352 = vmatpush2.bf16.msra.mxu0 %v3591_v21 }
 0x19c   :  { %2353 = vmatprep.subr.bf16.mxu0 %v3596_v22  ;;  %2393 = vmatpush2.bf16.msra.mxu1 %v3672_v55  ;;  %v3645_v55 = vld [vmem:[%s4999_s5 + $0x28] ss:$16 sps:$4 sm:$0xff]  }
 0x19d   :  { %2394 = vmatprep.subr.bf16.mxu1 %v3680_v56 }
 0x19f   :  { %2354 = vmatpush2.bf16.msra.mxu0 %v3594_v25 }
 0x1a0   :  { %2355 = vmatprep.subr.bf16.mxu0 %v3599_v26  ;;  %2395 = vmatpush2.bf16.msra.mxu1 %v3678_v58  ;;  %v3653_v58 = vld [vmem:[%s4999_s5 + $0xc] ss:$16 sps:$4 sm:$0xff]  }
 0x1a1   :  { %2396 = vmatprep.subr.bf16.mxu1 %v3686_v59 }
 0x1a3   :  { %2356 = vmatpush2.bf16.msra.mxu0 %v3597_v29 }
 0x1a4   :  { %2357 = vmatprep.subr.bf16.mxu0 %v3602_v30  ;;  %2397 = vmatpush2.bf16.msra.mxu1 %v3684_v60 }
 0x1a5   :  { %2398 = vmatprep.subr.bf16.mxu1 %v3692_v61 }
 0x1a7   :  { %2358 = vmatpush2.bf16.msra.mxu0 %v3600_v33 }
 0x1a8   :  { %2359 = vmatprep.subr.bf16.mxu0 %v3605_v34  ;;  %2399 = vmatpush2.bf16.msra.mxu1 %v3690_v62  ;;  %v3617_v34 = vld [vmem:[%s4999_s5 + $0xcc] ss:$16 sps:$4 sm:$0xff]  }
 0x1a9   :  { %2400 = vmatprep.subr.bf16.mxu1 %v3698_v63 }
 0x1ab   :  { %2360 = vmatpush2.bf16.msra.mxu0 %v3603_v37  ;;  %v3621_v37 = vld [vmem:[%s4999_s5 + $0xa8] ss:$16 sps:$4 sm:$0xff]  }
 0x1ac   :  { %2411 = vmatprep.subr.bf16.mxu0 %v3611_v38  ;;  %2401 = vmatpush2.bf16.msra.mxu1 %v3696_v0  ;;  %v3629_v38 = vld [vmem:[%s4999_s5 + $0x8c] ss:$16 sps:$4 sm:$0xff]  }
 0x1ad   :  { %2452 = vmatprep.subr.bf16.mxu1 %v3704_v1 }
 0x1ee   :  { %v1381_v3 = vpop.f32.mrf.mxu0 }
 0x1ef   :  { %v1382_v4 = vadd.f32 %v1381_v3, %v690_v57  ;;  %v1422_v5 = vpop.f32.mrf.mxu1  ;;  %v3659_v57 = vld [vmem:[%s4999_s5 + $0x1ec] ss:$16 sps:$4 sm:$0xff]   ;;  %v3657_v3 = vld [vmem:[%s4999_s5 + $0x1e8] ss:$16 sps:$4 sm:$0xff]  }
 0x1f0   :  { %v1383_v6 = vpop.f32.mrf.mxu0 }
 0x1f1   :  { %v1423_v7 = vadd.f32 %v1422_v5, %v1382_v4  ;;  %v1384_v12 = vadd.f32 %v1383_v6, %v694_v2  ;;  %v1424_v13 = vpop.f32.mrf.mxu1  ;;  %v3665_v4 = vld [vmem:[%s4999_s5 + $0x1cc] ss:$16 sps:$4 sm:$0xff]   ;;  %v3663_v5 = vld [vmem:[%s4999_s5 + $0x1c8] ss:$16 sps:$4 sm:$0xff]  }
 0x1f2   :  { %v1385_v14 = vpop.f32.mrf.mxu0  ;;  %v3671_v6 = vld [vmem:[%s4999_s5 + $0x1ac] ss:$16 sps:$4 sm:$0xff]  }
 0x1f3   :  { %v1511_v15 = vsub.f32 0.0, %v1423_v7  ;;  %v1425_v16 = vadd.f32 %v1424_v13, %v1384_v12  ;;  %v1426_v17 = vpop.f32.mrf.mxu1  ;;  %v3677_v12 = vld [vmem:[%s4999_s5 + $0x18c] ss:$16 sps:$4 sm:$0xff]  }
 0x1f4   :  { %v1386_v18 = vpop.f32.mrf.mxu0  ;;  %v3683_v17 = vld [vmem:[%s4999_s5 + $0x16c] ss:$16 sps:$4 sm:$0xff]  }
 0x1f5   :  { %v1515_v19 = vmul.f32 1.442695, %v1511_v15  ;;  %v1512_v20 = vsub.f32 0.0, %v1425_v16  ;;  %v1427_v21 = vpop.f32.mrf.mxu1  ;;  %v3675_v15 = vld [vmem:[%s4999_s5 + $0x188] ss:$16 sps:$4 sm:$0xff]  }
 0x1f6   :  { %v3687_v21 = vld [vmem:[%s4999_s5 + $0x148] ss:$16 sps:$4 sm:$0xff]  }
 0x1f7   :  { %3798 = vpow2.f32 %v1515_v19  ;;  %v1517_v22 = vmul.f32 1.442695, %v1512_v20  ;;  %v3681_v19 = vld [vmem:[%s4999_s5 + $0x168] ss:$16 sps:$4 sm:$0xff]   ;;  %v3689_v20 = vld [vmem:[%s4999_s5 + $0x14c] ss:$16 sps:$4 sm:$0xff]  }
 0x1f9   :  { %3800 = vpow2.f32 %v1517_v22  ;;  %v3695_v22 = vld [vmem:[%s4999_s5 + $0x12c] ss:$16 sps:$4 sm:$0xff]  }
 0x204   :  { %v3799_v23 = vpop.eup %3798 }
 0x205   :  { %v1523_v24 = vadd.f32 1.0, %v3799_v23  ;;  %v3693_v23 = vld [vmem:[%s4999_s5 + $0x128] ss:$16 sps:$4 sm:$0xff]  }
 0x206   :  { %v3801_v25 = vpop.eup %3800 }
 0x207   :  { %3802 = vrcp.f32 %v1523_v24  ;;  %v1524_v26 = vadd.f32 1.0, %v3801_v25  ;;  %v3701_v24 = vld [vmem:[%s4999_s5 + $0x10c] ss:$16 sps:$4 sm:$0xff]  }
 0x209   :  { %3804 = vrcp.f32 %v1524_v26  ;;  %v3699_v26 = vld [vmem:[%s4999_s5 + $0x108] ss:$16 sps:$4 sm:$0xff]  }
 0x214   :  { %v3803_v27 = vpop.eup %3802 }
 0x215   :  { %v1531_v29 = vmul.f32 %v3803_v27, %v1423_v7  ;;  %v3669_v7 = vld [vmem:[%s4999_s5 + $0x1a8] ss:$16 sps:$4 sm:$0xff]  }
 0x216   :  { %v3805_v28 = vpop.eup %3804 }
 0x217   :  { %v1532_v30 = vmul.f32 %v3805_v28, %v1425_v16  ;;  %v4692_v33 = vpack.c.bf16 %v1531_v29, %v1531_v29 }
 0x219   :  { %v1536_v31 = vpack.c.bf16 %v1532_v30, %v1532_v30 }
 0x21b   :  { %2361 = vmatprep.mubr.bf16.mxu0 %v1536_v31 }
 0x21c   :  { %2362 = vmatmul.mubr.bf16.vlgmr.msra.gmra.mxu0 %v4692_v33 }
 0x21d   :  { %2412 = vmatpush1.bf16.msra.mxu0 %v3609_v32  ;;  %2443 = vmatprep.mubr.bf16.mxu0 %v1536_v31  ;;  %v3702_v31 = vld [vmem:[%s4999_s5 + $0x2e8] ss:$16 sps:$4 sm:$0xff]  }
 0x21e   :  { %2413 = vmatprep.subr.bf16.mxu0 %v3617_v34  ;;  %v3707_v34 = vld [vmem:[%s4999_s5 + $0x2cc] ss:$16 sps:$4 sm:$0xff]  }
 0x221   :  { %2414 = vmatpush1.bf16.msra.mxu0 %v3615_v35  ;;  %v3705_v35 = vld [vmem:[%s4999_s5 + $0x2c8] ss:$16 sps:$4 sm:$0xff]  }
 0x222   :  { %2415 = vmatprep.subr.bf16.mxu0 %v3623_v36  ;;  %v3710_v36 = vld [vmem:[%s4999_s5 + $0x2ac] ss:$16 sps:$4 sm:$0xff]  }
 0x225   :  { %2416 = vmatpush1.bf16.msra.mxu0 %v3621_v37  ;;  %v3708_v37 = vld [vmem:[%s4999_s5 + $0x2a8] ss:$16 sps:$4 sm:$0xff]  }
 0x226   :  { %2417 = vmatprep.subr.bf16.mxu0 %v3629_v38  ;;  %v3711_v38 = vld [vmem:[%s4999_s5 + $0x288] ss:$16 sps:$4 sm:$0xff]  }
 0x229   :  { %2418 = vmatpush1.bf16.msra.mxu0 %v3627_v39  ;;  %v3716_v39 = vld [vmem:[%s4999_s5 + $0x26c] ss:$16 sps:$4 sm:$0xff]  }
 0x22a   :  { %2419 = vmatprep.subr.bf16.mxu0 %v3635_v40  ;;  %v3714_v40 = vld [vmem:[%s4999_s5 + $0x268] ss:$16 sps:$4 sm:$0xff]  }
 0x22d   :  { %2420 = vmatpush1.bf16.msra.mxu0 %v3633_v41  ;;  %v3719_v41 = vld [vmem:[%s4999_s5 + $0x24c] ss:$16 sps:$4 sm:$0xff]  }
 0x22e   :  { %v1463_v46 = vpop.f32.mrf.mxu0  ;;  %2421 = vmatprep.subr.bf16.mxu0 %v3641_v42  ;;  %v3717_v42 = vld [vmem:[%s4999_s5 + $0x248] ss:$16 sps:$4 sm:$0xff]  }
 0x22f   :  { %v1464_v48 = vadd.f32 %v1463_v46, %v698_v43  ;;  %v1504_v49 = vpop.f32.mrf.mxu1  ;;  %v3722_v43 = vld [vmem:[%s4999_s5 + $0x22c] ss:$16 sps:$4 sm:$0xff]   ;;  %v3723_v46 = vld [vmem:[%s4999_s5 + $0x208] ss:$16 sps:$4 sm:$0xff]  }
 0x230   :  { %v1465_v50 = vpop.f32.mrf.mxu0 }
 0x231   :  { %v1505_v51 = vadd.f32 %v1504_v49, %v1464_v48  ;;  %v1466_v52 = vadd.f32 %v1465_v50, %v702_v44  ;;  %v1506_v53 = vpop.f32.mrf.mxu1  ;;  %2422 = vmatpush1.bf16.msra.mxu0 %v3639_v45  ;;  %v3720_v44 = vld [vmem:[%s4999_s5 + $0x228] ss:$16 sps:$4 sm:$0xff]   ;;  %v3725_v45 = vld [vmem:[%s4999_s5 + $0x20c] ss:$16 sps:$4 sm:$0xff]  }
 0x232   :  { %v1467_v56 = vpop.f32.mrf.mxu0  ;;  %2423 = vmatprep.subr.bf16.mxu0 %v3647_v47  ;;  %v3728_v47 = vld [vmem:[%s4999_s5 + $0x3ec] ss:$16 sps:$4 sm:$0xff]   ;;  %v3726_v48 = vld [vmem:[%s4999_s5 + $0x3e8] ss:$16 sps:$4 sm:$0xff]  }
 0x233   :  { %v1513_v59 = vsub.f32 0.0, %v1505_v51  ;;  %v1507_v60 = vadd.f32 %v1506_v53, %v1466_v52  ;;  %v1508_v61 = vpop.f32.mrf.mxu1  ;;  %v3731_v49 = vld [vmem:[%s4999_s5 + $0x3cc] ss:$16 sps:$4 sm:$0xff]   ;;  %v3729_v50 = vld [vmem:[%s4999_s5 + $0x3c8] ss:$16 sps:$4 sm:$0xff]  }
 0x234   :  { %v1468_v62 = vpop.f32.mrf.mxu0  ;;  %v3732_v52 = vld [vmem:[%s4999_s5 + $0x3a8] ss:$16 sps:$4 sm:$0xff]   ;;  %v3737_v53 = vld [vmem:[%s4999_s5 + $0x38c] ss:$16 sps:$4 sm:$0xff]  }
 0x235   :  { %v1519_v63 = vmul.f32 1.442695, %v1513_v59  ;;  %v1514_v0 = vsub.f32 0.0, %v1507_v60  ;;  %v1509_v1 = vpop.f32.mrf.mxu1  ;;  %2424 = vmatpush1.bf16.msra.mxu0 %v3645_v55  ;;  %v3735_v55 = vld [vmem:[%s4999_s5 + $0x388] ss:$16 sps:$4 sm:$0xff]  }
 0x236   :  { %2425 = vmatprep.subr.bf16.mxu0 %v3653_v58  ;;  %v3740_v56 = vld [vmem:[%s4999_s5 + $0x36c] ss:$16 sps:$4 sm:$0xff]   ;;  %v3738_v58 = vld [vmem:[%s4999_s5 + $0x368] ss:$16 sps:$4 sm:$0xff]  }
 0x237   :  { %3806 = vpow2.f32 %v1519_v63  ;;  %v1521_v2 = vmul.f32 1.442695, %v1514_v0  ;;  %v3743_v59 = vld [vmem:[%s4999_s5 + $0x34c] ss:$16 sps:$4 sm:$0xff]   ;;  %v3744_v62 = vld [vmem:[%s4999_s5 + $0x328] ss:$16 sps:$4 sm:$0xff]  }
 0x238   :  { %v3746_v61 = vld [vmem:[%s4999_s5 + $0x32c] ss:$16 sps:$4 sm:$0xff]   ;;  %v3747_v0 = vld [vmem:[%s4999_s5 + $0x308] ss:$16 sps:$4 sm:$0xff]  }
 0x239   :  { %3808 = vpow2.f32 %v1521_v2  ;;  %2426 = vmatpush1.bf16.msra.mxu0 %v3651_v54  ;;  %v3749_v63 = vld [vmem:[%s4999_s5 + $0x30c] ss:$16 sps:$4 sm:$0xff]   ;;  %v3753_v2 = vld [vmem:[%s5002_s7 + $0x30] sm:$0xff]  }
 0x23a   :  { %2427 = vmatprep.subr.bf16.mxu0 %v3659_v57  ;;  %v3750_v1 = vld [vmem:[%s5002_s7 + $0x78] sm:$0xff]   ;;  %v3752_v57 = vld [vmem:[%s5002_s7 + $0x70] sm:$0xff]  }
 0x23b   :  { %v3751_v54 = vld [vmem:[%s5002_s7 + $0x38] sm:$0xff]  }
 0x23d   :  { %2428 = vmatpush2.bf16.msra.mxu0 %v3657_v3  ;;  %v3754_v3 = vld [vmem:[%s5002_s7 + $0x68] sm:$0xff]  }
 0x23e   :  { %2429 = vmatprep.subr.bf16.mxu0 %v3665_v4  ;;  %v3755_v4 = vld [vmem:[%s5002_s7 + $0x28] sm:$0xff]  }
 0x241   :  { %2430 = vmatpush2.bf16.msra.mxu0 %v3663_v5  ;;  %v3756_v5 = vld [vmem:[%s5002_s7 + $0x60] sm:$0xff]  }
 0x242   :  { %2431 = vmatprep.subr.bf16.mxu0 %v3671_v6  ;;  %v3757_v6 = vld [vmem:[%s5002_s7 + $0x20] sm:$0xff]  }
 0x244   :  { %v3807_v13 = vpop.eup %3806 }
 0x245   :  { %v1525_v14 = vadd.f32 1.0, %v3807_v13  ;;  %2432 = vmatpush2.bf16.msra.mxu0 %v3669_v7  ;;  %v3758_v7 = vld [vmem:[%s5002_s7 + $0x58] sm:$0xff]   ;;  %v3760_v13 = vld [vmem:[%s5002_s7 + $0x50] sm:$0xff]  }
 0x246   :  { %v3809_v16 = vpop.eup %3808  ;;  %2433 = vmatprep.subr.bf16.mxu0 %v3677_v12  ;;  %v3759_v12 = vld [vmem:[%s5002_s7 + $0x18] sm:$0xff]  }
 0x247   :  { %3810 = vrcp.f32 %v1525_v14  ;;  %v1526_v18 = vadd.f32 1.0, %v3809_v16  ;;  %v3761_v14 = vld [vmem:[%s5002_s7 + $0x10] sm:$0xff]   ;;  %v3763_v16 = vld [vmem:[%s5002_s7 + $0x8] sm:$0xff]  }
 0x249   :  { %3812 = vrcp.f32 %v1526_v18  ;;  %2434 = vmatpush2.bf16.msra.mxu0 %v3675_v15  ;;  %v3762_v15 = vld [vmem:[%s5002_s7 + $0x48] sm:$0xff]   ;;  %v3765_v18 = vld [vmem:[%s5002_s7] sm:$0xff]  }
 0x24a   :  { %2435 = vmatprep.subr.bf16.mxu0 %v3683_v17  ;;  %v3764_v17 = vld [vmem:[%s5002_s7 + $0x40] sm:$0xff]  }
 0x24d   :  { %2436 = vmatpush2.bf16.msra.mxu0 %v3681_v19 }
 0x24e   :  { %2437 = vmatprep.subr.bf16.mxu0 %v3689_v20 }
 0x251   :  { %2438 = vmatpush2.bf16.msra.mxu0 %v3687_v21 }
 0x252   :  { %2439 = vmatprep.subr.bf16.mxu0 %v3695_v22 }
 0x254   :  { %v3811_v25 = vpop.eup %3810 }
 0x255   :  { %2440 = vmatpush2.bf16.msra.mxu0 %v3693_v23  ;;  %v1533_v28 = vmul.f32 %v3811_v25, %v1505_v51  ;;  %v3734_v51 = vld [vmem:[%s4999_s5 + $0x3ac] ss:$16 sps:$4 sm:$0xff]   ;;  %v3768_v25 = vld [vmem:[%s5002_s7 + $0xf0] sm:$0xff]  }
 0x256   :  { %v3813_v27 = vpop.eup %3812  ;;  %2441 = vmatprep.subr.bf16.mxu0 %v3701_v24  ;;  %v3766_v23 = vld [vmem:[%s5002_s7 + $0xf8] sm:$0xff]  }
 0x257   :  { %v1534_v29 = vmul.f32 %v3813_v27, %v1507_v60  ;;  %v4792_v32 = vpack.c.bf16 %v1533_v28, %v1533_v28  ;;  %v3741_v60 = vld [vmem:[%s4999_s5 + $0x348] ss:$16 sps:$4 sm:$0xff]  }
 0x258   :  { %v3767_v24 = vld [vmem:[%s5002_s7 + $0xb8] sm:$0xff]   ;;  %v3770_v27 = vld [vmem:[%s5002_s7 + $0xe8] sm:$0xff]  }
 0x259   :  { %v1538_v30 = vpack.c.bf16 %v1534_v29, %v1534_v29  ;;  %2442 = vmatpush2.bf16.msra.mxu0 %v3699_v26  ;;  %v3769_v26 = vld [vmem:[%s5002_s7 + $0xb0] sm:$0xff]   ;;  %v3771_v28 = vld [vmem:[%s5002_s7 + $0xa8] sm:$0xff]   ;;  %v3772_v29 = vld [vmem:[%s5002_s7 + $0xe0] sm:$0xff]  }
 0x25a   :  { %3224 = vmatprep.subr.bf16.mxu0 %v3750_v1 }
 0x25b   :  { %2402 = vmatprep.mubr.bf16.mxu1 %v1538_v30 }
 0x25c   :  { %2403 = vmatmul.mubr.bf16.vlgmr.msra.gmra.mxu1 %v4792_v32  ;;  %2444 = vmatmul.mubr.bf16.vlgmr.msra.gmra.mxu0 %v4692_v33  ;;  %v3713_v33 = vld [vmem:[%s4999_s5 + $0x28c] ss:$16 sps:$4 sm:$0xff]  }
 0x25d   :  { %2453 = vmatpush1.bf16.msra.mxu1 %v3702_v31  ;;  %2484 = vmatprep.mubr.bf16.mxu1 %v1538_v30  ;;  %v3773_v30 = vld [vmem:[%s5002_s7 + $0xa0] sm:$0xff]   ;;  %v3774_v31 = vld [vmem:[%s5002_s7 + $0xd8] sm:$0xff]  }
 0x25e   :  { %2454 = vmatprep.subr.bf16.mxu1 %v3707_v34  ;;  %3225 = vmatpush3.bf16.msra.mxu0 %v3751_v54  ;;  %v3776_v34 = vld [vmem:[%s5002_s7 + $0xd0] sm:$0xff]  }
 0x25f   :  { %3226 = vmatprep.subr.bf16.mxu0 %v3752_v57 }
 0x261   :  { %2455 = vmatpush1.bf16.msra.mxu1 %v3705_v35  ;;  %v3777_v35 = vld [vmem:[%s5002_s7 + $0x90] sm:$0xff]  }
 0x262   :  { %2456 = vmatprep.subr.bf16.mxu1 %v3710_v36  ;;  %3227 = vmatpush3.bf16.msra.mxu0 %v3753_v2  ;;  %v3778_v36 = vld [vmem:[%s5002_s7 + $0xc8] sm:$0xff]  }
 0x263   :  { %3228 = vmatprep.subr.bf16.mxu0 %v3754_v3 }
 0x265   :  { %2457 = vmatpush1.bf16.msra.mxu1 %v3708_v37  ;;  %v3779_v37 = vld [vmem:[%s5002_s7 + $0x88] sm:$0xff]  }
 0x266   :  { %2458 = vmatprep.subr.bf16.mxu1 %v3713_v33  ;;  %3229 = vmatpush3.bf16.msra.mxu0 %v3755_v4  ;;  %v3780_v33 = vld [vmem:[%s5002_s7 + $0xc0] sm:$0xff]  }
 0x267   :  { %3230 = vmatprep.subr.bf16.mxu0 %v3756_v5 }
 0x269   :  { %2459 = vmatpush1.bf16.msra.mxu1 %v3711_v38  ;;  %v3781_v38 = vld [vmem:[%s5002_s7 + $0x80] sm:$0xff]  }
 0x26a   :  { %2460 = vmatprep.subr.bf16.mxu1 %v3716_v39  ;;  %3231 = vmatpush3.bf16.msra.mxu0 %v3757_v6  ;;  %v1667_v39 = vld [vmem:[%s5003_s6] sm:$0xf] }
 0x26b   :  { %3232 = vmatprep.subr.bf16.mxu0 %v3758_v7  ;;  %v1680_v2 = vrot.slane %v1667_v39, %v4278_v9  ;;  %v1684_v3 = vrot.slane %v1667_v39, %v4282_v11 }
 0x26d   :  { %2461 = vmatpush1.bf16.msra.mxu1 %v3714_v40  ;;  %v1672_v40 = vrot.slane %v1667_v39, %v4276_v8 }
 0x26e   :  { %2462 = vmatprep.subr.bf16.mxu1 %v3719_v41  ;;  %3233 = vmatpush3.bf16.msra.mxu0 %v3759_v12  ;;  %v1676_v41 = vrot.slane %v1667_v39, %v4280_v10 }
 0x26f   :  { %3234 = vmatprep.subr.bf16.mxu0 %v3760_v13 }
 0x271   :  { %2463 = vmatpush1.bf16.msra.mxu1 %v3717_v42 }
 0x272   :  { %2464 = vmatprep.subr.bf16.mxu1 %v3722_v43  ;;  %3235 = vmatpush3.bf16.msra.mxu0 %v3761_v14 }
 0x273   :  { %3236 = vmatprep.subr.bf16.mxu0 %v3762_v15 }
 0x275   :  { %2465 = vmatpush1.bf16.msra.mxu1 %v3720_v44 }
 0x276   :  { %2466 = vmatprep.subr.bf16.mxu1 %v3725_v45  ;;  %3237 = vmatpush3.bf16.msra.mxu0 %v3763_v16 }
 0x277   :  { %3238 = vmatprep.subr.bf16.mxu0 %v3764_v17 }
 0x279   :  { %2467 = vmatpush1.bf16.msra.mxu1 %v3723_v46 }
 0x27a   :  { %2468 = vmatprep.subr.bf16.mxu1 %v3728_v47  ;;  %3239 = vmatpush3.bf16.msra.mxu0 %v3765_v18 }
 0x27d   :  { %2469 = vmatpush2.bf16.msra.mxu1 %v3726_v48 }
 0x27e   :  { %2470 = vmatprep.subr.bf16.mxu1 %v3731_v49 }
 0x281   :  { %2471 = vmatpush2.bf16.msra.mxu1 %v3729_v50 }
 0x282   :  { %2472 = vmatprep.subr.bf16.mxu1 %v3734_v51 }
 0x285   :  { %2473 = vmatpush2.bf16.msra.mxu1 %v3732_v52 }
 0x286   :  { %2474 = vmatprep.subr.bf16.mxu1 %v3737_v53 }
 0x289   :  { %2475 = vmatpush2.bf16.msra.mxu1 %v3735_v55 }
 0x28a   :  { %2476 = vmatprep.subr.bf16.mxu1 %v3740_v56 }
 0x28d   :  { %2477 = vmatpush2.bf16.msra.mxu1 %v3738_v58 }
 0x28e   :  { %2478 = vmatprep.subr.bf16.mxu1 %v3743_v59 }
 0x291   :  { %2479 = vmatpush2.bf16.msra.mxu1 %v3741_v60 }
 0x292   :  { %2480 = vmatprep.subr.bf16.mxu1 %v3746_v61 }
 0x295   :  { %2481 = vmatpush2.bf16.msra.mxu1 %v3744_v62 }
 0x296   :  { %2482 = vmatprep.subr.bf16.mxu1 %v3749_v63 }
 0x299   :  { %2483 = vmatpush2.bf16.msra.mxu1 %v3747_v0 }
 0x29a   :  { %3246 = vmatprep.subr.bf16.mxu1 %v3766_v23 }
 0x29c   :  { %2485 = vmatmul.mubr.bf16.vlgmr.msra.gmra.mxu1 %v4792_v32  ;;  %v3775_v32 = vld [vmem:[%s5002_s7 + $0x98] sm:$0xff]  }
 0x29d   :  { %3247 = vmatpush3.bf16.msra.mxu1 %v3767_v24 }
 0x29e   :  { %3248 = vmatprep.subr.bf16.mxu1 %v3768_v25 }
 0x2a1   :  { %3249 = vmatpush3.bf16.msra.mxu1 %v3769_v26 }
 0x2a2   :  { %3250 = vmatprep.subr.bf16.mxu1 %v3770_v27 }
 0x2a5   :  { %3251 = vmatpush3.bf16.msra.mxu1 %v3771_v28 }
 0x2a6   :  { %3252 = vmatprep.subr.bf16.mxu1 %v3772_v29 }
 0x2a9   :  { %3253 = vmatpush3.bf16.msra.mxu1 %v3773_v30 }
 0x2aa   :  { %3254 = vmatprep.subr.bf16.mxu1 %v3774_v31 }
 0x2ad   :  { %3255 = vmatpush3.bf16.msra.mxu1 %v3775_v32 }
 0x2ae   :  { %3256 = vmatprep.subr.bf16.mxu1 %v3776_v34  ;;  %v3191_v34 = vld [vmem:[%s5004_s8] ss:$0 sm:$0xff] }
 0x2b1   :  { %3257 = vmatpush3.bf16.msra.mxu1 %v3777_v35 }
 0x2b2   :  { %3258 = vmatprep.subr.bf16.mxu1 %v3778_v36 }
 0x2b5   :  { %3259 = vmatpush3.bf16.msra.mxu1 %v3779_v37 }
 0x2b6   :  { %3260 = vmatprep.subr.bf16.mxu1 %v3780_v33 }
 0x2b9   :  { %3261 = vmatpush3.bf16.msra.mxu1 %v3781_v38 }
 0x2dc   :  { %v2363_v19 = vpop.f32.mrf.mxu0 }
 0x2dd   :  { %v2364_v42 = vadd.f32 %v2363_v19, %v1672_v40 }
 0x2de   :  { %v2365_v20 = vpop.f32.mrf.mxu0 }
 0x2df   :  { %v2366_v45 = vadd.f32 %v2365_v20, %v1676_v41 }
 0x2e0   :  { %v2367_v21 = vpop.f32.mrf.mxu0 }
 0x2e2   :  { %v2368_v22 = vpop.f32.mrf.mxu0 }
 0x31c   :  { %v2404_v43 = vpop.f32.mrf.mxu1  ;;  %v2445_v44 = vpop.f32.mrf.mxu0 }
 0x31d   :  { %v2405_v46 = vadd.f32 %v2404_v43, %v2364_v42  ;;  %v2446_v4 = vadd.f32 %v2445_v44, %v1680_v2 }
 0x31e   :  { %v2406_v47 = vpop.f32.mrf.mxu1  ;;  %v2447_v48 = vpop.f32.mrf.mxu0 }
 0x31f   :  { %v2493_v49 = vsub.f32 0.0, %v2405_v46  ;;  %v2407_v50 = vadd.f32 %v2406_v47, %v2366_v45  ;;  %v2448_v6 = vadd.f32 %v2447_v48, %v1684_v3 }
 0x320   :  { %v2408_v51 = vpop.f32.mrf.mxu1  ;;  %v2449_v52 = vpop.f32.mrf.mxu0 }
 0x321   :  { %v2497_v53 = vmul.f32 1.442695, %v2493_v49  ;;  %v2494_v55 = vsub.f32 0.0, %v2407_v50 }
 0x322   :  { %v2409_v56 = vpop.f32.mrf.mxu1  ;;  %v2450_v58 = vpop.f32.mrf.mxu0 }
 0x323   :  { %3814 = vpow2.f32 %v2497_v53  ;;  %v2499_v59 = vmul.f32 1.442695, %v2494_v55 }
 0x325   :  { %3816 = vpow2.f32 %v2499_v59 }
 0x330   :  { %v3815_v8 = vpop.eup %3814 }
 0x331   :  { %v2505_v10 = vadd.f32 1.0, %v3815_v8 }
 0x332   :  { %v3817_v60 = vpop.eup %3816 }
 0x333   :  { %3818 = vrcp.f32 %v2505_v10  ;;  %v2506_v61 = vadd.f32 1.0, %v3817_v60 }
 0x335   :  { %3820 = vrcp.f32 %v2506_v61 }
 0x340   :  { %v3819_v62 = vpop.eup %3818 }
 0x341   :  { %v2513_v0 = vmul.f32 %v3819_v62, %v2405_v46 }
 0x342   :  { %v3821_v63 = vpop.eup %3820 }
 0x343   :  { %v2514_v1 = vmul.f32 %v3821_v63, %v2407_v50  ;;  %v2517_v57 = vpack.c.bf16 %v2513_v0, %v2513_v0 }
 0x345   :  { %v2518_v54 = vpack.c.bf16 %v2514_v1, %v2514_v1 }
 0x347   :  { %2816 = vmatprep.mubr.bf16.mxu0 %v2518_v54 }
 0x348   :  { %2817 = vmatmul.mubr.bf16.vlgmr.msra.gmra.mxu0 %v2517_v57 }
 0x35c   :  { %v2486_v5 = vpop.f32.mrf.mxu1 }
 0x35d   :  { %v2487_v7 = vadd.f32 %v2486_v5, %v2446_v4 }
 0x35e   :  { %v2488_v12 = vpop.f32.mrf.mxu1 }
 0x35f   :  { %v2495_v13 = vsub.f32 0.0, %v2487_v7  ;;  %v2489_v14 = vadd.f32 %v2488_v12, %v2448_v6 }
 0x360   :  { %v2490_v15 = vpop.f32.mrf.mxu1 }
 0x361   :  { %v2501_v16 = vmul.f32 1.442695, %v2495_v13  ;;  %v2496_v17 = vsub.f32 0.0, %v2489_v14 }
 0x362   :  { %v2491_v18 = vpop.f32.mrf.mxu1 }
 0x363   :  { %3822 = vpow2.f32 %v2501_v16  ;;  %v2503_v19 = vmul.f32 1.442695, %v2496_v17 }
 0x365   :  { %3824 = vpow2.f32 %v2503_v19 }
 0x370   :  { %v3823_v20 = vpop.eup %3822 }
 0x371   :  { %v2507_v21 = vadd.f32 1.0, %v3823_v20 }
 0x372   :  { %v3825_v22 = vpop.eup %3824 }
 0x373   :  { %3826 = vrcp.f32 %v2507_v21  ;;  %v2508_v9 = vadd.f32 1.0, %v3825_v22 }
 0x375   :  { %3828 = vrcp.f32 %v2508_v9 }
 0x380   :  { %v3827_v11 = vpop.eup %3826 }
 0x381   :  { %v2515_v24 = vmul.f32 %v3827_v11, %v2487_v7 }
 0x382   :  { %v3829_v23 = vpop.eup %3828 }
 0x383   :  { %v2516_v25 = vmul.f32 %v3829_v23, %v2489_v14  ;;  %v2519_v27 = vpack.c.bf16 %v2515_v24, %v2515_v24 }
 0x385   :  { %v2520_v26 = vpack.c.bf16 %v2516_v25, %v2516_v25 }
 0x387   :  { %2856 = vmatprep.mubr.bf16.mxu1 %v2520_v26 }
 0x388   :  { %2857 = vmatmul.mubr.bf16.vlgmr.msra.gmra.mxu1 %v2519_v27 }
 0x408   :  { %v3240_v28 = vpop.f32.mrf.mxu0 }
 0x40a   :  { %v3241_v29 = vpop.f32.mrf.mxu0 }
 0x40b   :  { %v3242_v32 = vadd.f32 %v3241_v29, %v3240_v28 }
 0x40c   :  { %v3243_v30 = vpop.f32.mrf.mxu0 }
 0x40d   :  { %v2819_v37 = vadd.f32 %v3242_v32, %v3191_v34 }
 0x40e   :  { %v3244_v31 = vpop.f32.mrf.mxu0 }
 0x448   :  { %v3262_v35 = vpop.f32.mrf.mxu1 }
 0x44a   :  { %v3263_v36 = vpop.f32.mrf.mxu1 }
 0x44b   :  { %v3264_v33 = vadd.f32 %v3263_v36, %v3262_v35 }
 0x44c   :  { %v3265_v38 = vpop.f32.mrf.mxu1 }
 0x44d   :  { %v2859_v39 = vadd.f32 %v3264_v33, %v2819_v37 }
 0x44e   :  { %v3266_v40 = vpop.f32.mrf.mxu1 }
 0x44f   :  { %2864 = vst [vmem:[%s5005_s9] sm:$0xff] %v2859_v39 }

</bundles_post_ra>
